<compile_context>
chip_gen: v5e
topology: v5e:2x2
jax: 0.10.0
libtpu: 0.0.40
codegen_flags: <defaults>
</compile_context>

<pallas_src>
import functools

import numpy as np
import jax
import jax.numpy as jnp
from jax import lax
from jax.experimental import pallas as pl
from jax.experimental.pallas import tpu as pltpu


# ----------------------------------------------------------------------------
# In-kernel helpers
# ----------------------------------------------------------------------------
def _layer_norm_f32(x, gamma, beta, eps):
    """LayerNorm computed in fp32 (mirrors the torch LayerNorm subclass)."""
    xf = x.astype(jnp.float32)
    mu = jnp.mean(xf, axis=-1, keepdims=True)
    xc = xf - mu
    var = jnp.mean(xc * xc, axis=-1, keepdims=True)
    return xc * lax.rsqrt(var + eps) * gamma + beta


def resblock_kernel(x_ref,
                    ln1_g_ref, ln1_b_ref,
                    wqkv_ref, bqkv_ref,
                    wo_ref, bo_ref,
                    ln2_g_ref, ln2_b_ref,
                    wfc_ref, bfc_ref,
                    wproj_ref, bproj_ref,
                    o_ref,
                    qkv_ref, attn_ref,
                    *, n_head, eps):
    """One ResidualAttentionBlock for a (Bt, L, D) batch block.

    x_ref    : (Bt, L, D)  activations
    wqkv_ref : (D, 3D) bf16   fused [q|k|v] projection (q pre-scaled)
    wo_ref   : (D, D)  bf16   output projection
    wfc_ref  : (D, 4D) bf16,  wproj_ref : (4D, D) bf16
    qkv_ref  : VMEM (Bt, L, 3D) bf16 scratch
    attn_ref : VMEM (Bt, L, D)  bf16 scratch (head-concat buffer)
    """
    x3 = x_ref[...].astype(jnp.float32)           # (Bt, L, D)
    Bt, L, D = x3.shape
    hd = D // n_head
    M = Bt * L
    x = x3.reshape(M, D)                          # flatten rows for the MXU

    # ---------------- attention branch: x1 = x + out_proj(MHA(LN1(x))) ------
    h = _layer_norm_f32(x, ln1_g_ref[...], ln1_b_ref[...], eps)      # (M, D) f32

    # Fused QKV: one wide (M, D) @ (D, 3D) matmul, bf16 operands / f32 acc.
    qkv = jnp.dot(h.astype(jnp.bfloat16), wqkv_ref[...],
                  preferred_element_type=jnp.float32) + bqkv_ref[...]
    qkv_ref[...] = qkv.astype(jnp.bfloat16).reshape(Bt, L, 3 * D)

    # Per-head attention; heads are static lane slices of the fused buffer.
    for hi in range(n_head):
        q = qkv_ref[:, :, hi * hd:(hi + 1) * hd]                    # (Bt,L,hd) bf16
        k = qkv_ref[:, :, D + hi * hd:D + (hi + 1) * hd]
        v = qkv_ref[:, :, 2 * D + hi * hd:2 * D + (hi + 1) * hd]

        s = jnp.einsum('bqd,bkd->bqk', q, k,
                       preferred_element_type=jnp.float32)          # (Bt, L, L)
        s = s - jnp.max(s, axis=-1, keepdims=True)
        p = jnp.exp(s)
        p = p * pl.reciprocal(jnp.sum(p, axis=-1, keepdims=True), approx=True)

        oh = jnp.einsum('bqk,bkd->bqd', p.astype(jnp.bfloat16), v,
                        preferred_element_type=jnp.float32)         # (Bt, L, hd)
        attn_ref[:, :, hi * hd:(hi + 1) * hd] = oh.astype(jnp.bfloat16)

    # Single full-width output projection: (M, D) @ (D, D).
    proj = jnp.dot(attn_ref[...].reshape(M, D), wo_ref[...],
                   preferred_element_type=jnp.float32)
    x1 = x + proj + bo_ref[...]                                     # (M, D) f32

    # ---------------- MLP branch: out = x1 + c_proj(QuickGELU(c_fc(LN2(x1))))
    h2 = _layer_norm_f32(x1, ln2_g_ref[...], ln2_b_ref[...], eps)
    f = jnp.dot(h2.astype(jnp.bfloat16), wfc_ref[...],
                preferred_element_type=jnp.float32) + bfc_ref[...]
    # QuickGELU: f * sigmoid(1.702 f); exp + approx reciprocal -> EUP slot.
    f = f * pl.reciprocal(1.0 + jnp.exp(-1.702 * f), approx=True)
    m = jnp.dot(f.astype(jnp.bfloat16), wproj_ref[...],
                preferred_element_type=jnp.float32) + bproj_ref[...]

    o_ref[...] = (x1 + m).reshape(Bt, L, D).astype(o_ref.dtype)


# ----------------------------------------------------------------------------
# Wrappers
# ----------------------------------------------------------------------------
def _pick_batch_block(B, L, target_rows=256):
    """Rows per grid step ~ target_rows, but keep >= 2 steps when B >= 2."""
    bt = max(1, min(B, max(1, target_rows // max(L, 1))))
    while B % bt:
        bt -= 1
    if B >= 2 and B // bt < 2:
        bt = max(1, B // 2)
        while B % bt:
            bt -= 1
    return bt


def residual_attention_block(x_bld, p, *, n_head, eps=1e-5, batch_block=None):
    """x_bld: (B, L, D)  ->  (B, L, D), one ResidualAttentionBlock."""
    B, L, D = x_bld.shape
    H = n_head
    assert D % H == 0, "width must divide by heads"
    assert D % 128 == 0, "width must be lane-dense (multiple of 128)"
    assert L % 8 == 0, "seq length must be sublane-dense (multiple of 8)"
    hd = D // H
    scale = 1.0 / float(np.sqrt(hd))

    Bt = _pick_batch_block(B, L) if batch_block is None else batch_block
    assert B % Bt == 0

    f32, bf16 = jnp.float32, jnp.bfloat16

    # --- weight plumbing (outside the kernel, pure layout) -----------------
    # Fused QKV with the attention scale folded into the q projection.
    wqkv = jnp.concatenate([p["wq"] * scale, p["wk"], p["wv"]], axis=1).astype(bf16)
    bqkv = jnp.concatenate([p["bq"] * scale, p["bk"], p["bv"]]).reshape(1, 3 * D).astype(f32)
    wo = p["wo"].astype(bf16)
    wfc = p["wfc"].astype(bf16)
    wproj = p["wproj"].astype(bf16)

    ln1_g = p["ln1_g"].reshape(1, D).astype(f32)
    ln1_b = p["ln1_b"].reshape(1, D).astype(f32)
    ln2_g = p["ln2_g"].reshape(1, D).astype(f32)
    ln2_b = p["ln2_b"].reshape(1, D).astype(f32)
    bo = p["bo"].reshape(1, D).astype(f32)
    bfc = p["bfc"].reshape(1, 4 * D).astype(f32)
    bproj = p["bproj"].reshape(1, D).astype(f32)

    def _full_spec(*shape):
        n = len(shape)
        return pl.BlockSpec(shape, lambda b, _n=n: (0,) * _n)

    kernel = functools.partial(resblock_kernel, n_head=H, eps=eps)

    return pl.pallas_call(
        kernel,
        out_shape=jax.ShapeDtypeStruct((B, L, D), x_bld.dtype),
        grid_spec=pltpu.PrefetchScalarGridSpec(
            num_scalar_prefetch=0,
            grid=(B // Bt,),
            in_specs=[
                pl.BlockSpec((Bt, L, D), lambda b: (b, 0, 0)),   # x (batch block)
                _full_spec(1, D), _full_spec(1, D),              # ln1 gamma/beta
                _full_spec(D, 3 * D), _full_spec(1, 3 * D),      # fused Wqkv, bqkv
                _full_spec(D, D), _full_spec(1, D),              # Wo, bo
                _full_spec(1, D), _full_spec(1, D),              # ln2 gamma/beta
                _full_spec(D, 4 * D), _full_spec(1, 4 * D),      # c_fc
                _full_spec(4 * D, D), _full_spec(1, D),          # c_proj
            ],
            out_specs=pl.BlockSpec((Bt, L, D), lambda b: (b, 0, 0)),
            scratch_shapes=[
                pltpu.VMEM((Bt, L, 3 * D), bf16),                # fused qkv
                pltpu.VMEM((Bt, L, D), bf16),                    # head concat
            ],
        ),
        compiler_params=pltpu.CompilerParams(
            dimension_semantics=("parallel",),                   # shards across TCs
            vmem_limit_bytes=48 * 1024 * 1024),
    )(x_bld, ln1_g, ln1_b, wqkv, bqkv, wo, bo,
      ln2_g, ln2_b, wfc, bfc, wproj, bproj)


def transformer_forward(x_lnd, layer_params, *, n_head):
    """Transformer.forward: sequential ResidualAttentionBlocks.

    x_lnd: (L, N, D) — torch nn.MultiheadAttention default (seq, batch, width).
    """
    x = jnp.transpose(x_lnd, (1, 0, 2))          # (N, L, D) for the kernels
    for p in layer_params:
        x = residual_attention_block(x, p, n_head=n_head)
    return jnp.transpose(x, (1, 0, 2))           # back to (L, N, D)


# ----------------------------------------------------------------------------
# Pure-JAX reference (mirrors the PyTorch math, all f32)
# ----------------------------------------------------------------------------
def _ref_resblock(x, p, n_head, eps=1e-5):
    B, L, D = x.shape
    H = n_head
    hd = D // H
    scale = 1.0 / float(np.sqrt(hd))

    def ln(y, g, b):
        yf = y.astype(jnp.float32)
        mu = yf.mean(-1, keepdims=True)
        var = ((yf - mu) ** 2).mean(-1, keepdims=True)
        return (yf - mu) * lax.rsqrt(var + eps) * g + b

    h = ln(x, p["ln1_g"], p["ln1_b"])
    q = h @ p["wq"] + p["bq"]
    k = h @ p["wk"] + p["bk"]
    v = h @ p["wv"] + p["bv"]
    q = q.reshape(B, L, H, hd).transpose(0, 2, 1, 3)
    k = k.reshape(B, L, H, hd).transpose(0, 2, 1, 3)
    v = v.reshape(B, L, H, hd).transpose(0, 2, 1, 3)
    s = jnp.einsum("bhqd,bhkd->bhqk", q * scale, k)
    a = jax.nn.softmax(s, axis=-1)
    o = jnp.einsum("bhqk,bhkd->bhqd", a, v)
    o = o.transpose(0, 2, 1, 3).reshape(B, L, D)
    x1 = x + (o @ p["wo"] + p["bo"])

    h2 = ln(x1, p["ln2_g"], p["ln2_b"])
    f = h2 @ p["wfc"] + p["bfc"]
    f = f * jax.nn.sigmoid(1.702 * f)            # QuickGELU
    m = f @ p["wproj"] + p["bproj"]
    return (x1 + m).astype(x.dtype)


def reference_forward(x_lnd, layer_params, *, n_head):
    x = jnp.transpose(x_lnd, (1, 0, 2))
    for p in layer_params:
        x = _ref_resblock(x, p, n_head)
    return jnp.transpose(x, (1, 0, 2))


# ----------------------------------------------------------------------------
# Parameter init (deterministic)
# ----------------------------------------------------------------------------
def init_layer_params(key, d):
    ks = jax.random.split(key, 16)
    std = 0.02
    rnd = lambda k, shape: std * jax.random.normal(k, shape, jnp.float32)
    return dict(
        ln1_g=1.0 + 0.1 * jax.random.normal(ks[0], (d,), jnp.float32),
        ln1_b=0.1 * jax.random.normal(ks[1], (d,), jnp.float32),
        wq=rnd(ks[2], (d, d)), bq=rnd(ks[3], (d,)),
        wk=rnd(ks[4], (d, d)), bk=rnd(ks[5], (d,)),
        wv=rnd(ks[6], (d, d)), bv=rnd(ks[7], (d,)),
        wo=rnd(ks[8], (d, d)), bo=rnd(ks[9], (d,)),
        ln2_g=1.0 + 0.1 * jax.random.normal(ks[10], (d,), jnp.float32),
        ln2_b=0.1 * jax.random.normal(ks[11], (d,), jnp.float32),
        wfc=rnd(ks[12], (d, 4 * d)), bfc=rnd(ks[13], (4 * d,)),
        wproj=rnd(ks[14], (4 * d, d)), bproj=rnd(ks[15], (d,)),
    )


if __name__ == "__main__":
    key = jax.random.PRNGKey(0)

    # Small, hardware-friendly shapes: seq multiple of 8, width multiple of 128.
    L, B, D, HEADS, LAYERS = 16, 2, 128, 4, 2

    kx, kp = jax.random.split(key)
    x = jax.random.normal(kx, (L, B, D), jnp.float32)          # (seq, batch, width)
    params = [init_layer_params(k, D) for k in jax.random.split(kp, LAYERS)]

    out = transformer_forward(x, params, n_head=HEADS)
    out = jax.block_until_ready(out)

    ref = reference_forward(x, params, n_head=HEADS)
    assert out.shape == (L, B, D)
    # bf16 MXU operands vs the all-f32 reference -> slightly relaxed tolerance.
    np.testing.assert_allclose(np.asarray(out), np.asarray(ref),
                               rtol=1e-2, atol=1e-2)

    print("KERNEL_OK")
</pallas_src>

<mosaic_0001>
module attributes {stable_mosaic.version = 11 : i64} {
  func.func @resblock_kernel(%arg0: i32, %arg1: memref<1x16x128xf32, #tpu.memory_space<vmem>>, %arg2: memref<1x128xf32, #tpu.memory_space<vmem>>, %arg3: memref<1x128xf32, #tpu.memory_space<vmem>>, %arg4: memref<128x384xbf16, #tpu.memory_space<vmem>>, %arg5: memref<1x384xf32, #tpu.memory_space<vmem>>, %arg6: memref<128x128xbf16, #tpu.memory_space<vmem>>, %arg7: memref<1x128xf32, #tpu.memory_space<vmem>>, %arg8: memref<1x128xf32, #tpu.memory_space<vmem>>, %arg9: memref<1x128xf32, #tpu.memory_space<vmem>>, %arg10: memref<128x512xbf16, #tpu.memory_space<vmem>>, %arg11: memref<1x512xf32, #tpu.memory_space<vmem>>, %arg12: memref<512x128xbf16, #tpu.memory_space<vmem>>, %arg13: memref<1x128xf32, #tpu.memory_space<vmem>>, %arg14: memref<1x16x128xf32, #tpu.memory_space<vmem>>, %arg15: memref<1x16x384xbf16, #tpu.memory_space<vmem>>, %arg16: memref<1x16x128xbf16, #tpu.memory_space<vmem>>) attributes {dimension_semantics = [#tpu.dimension_semantics<parallel>], iteration_bounds = array<i64: 2>, scalar_prefetch = 0 : i64, scratch_operands = 2 : i64, tpu.core_type = #tpu.core_type<tc>, window_params = [{transform_indices = @transform_0, window_bounds = array<i64: 1, 16, 128>}, {pipeline_mode = #tpu.pipeline_mode<synchronous>, transform_indices = @transform_1, window_bounds = array<i64: 1, 128>}, {pipeline_mode = #tpu.pipeline_mode<synchronous>, transform_indices = @transform_2, window_bounds = array<i64: 1, 128>}, {pipeline_mode = #tpu.pipeline_mode<synchronous>, transform_indices = @transform_3, window_bounds = array<i64: 128, 384>}, {pipeline_mode = #tpu.pipeline_mode<synchronous>, transform_indices = @transform_4, window_bounds = array<i64: 1, 384>}, {pipeline_mode = #tpu.pipeline_mode<synchronous>, transform_indices = @transform_5, window_bounds = array<i64: 128, 128>}, {pipeline_mode = #tpu.pipeline_mode<synchronous>, transform_indices = @transform_6, window_bounds = array<i64: 1, 128>}, {pipeline_mode = #tpu.pipeline_mode<synchronous>, transform_indices = @transform_7, window_bounds = array<i64: 1, 128>}, {pipeline_mode = #tpu.pipeline_mode<synchronous>, transform_indices = @transform_8, window_bounds = array<i64: 1, 128>}, {pipeline_mode = #tpu.pipeline_mode<synchronous>, transform_indices = @transform_9, window_bounds = array<i64: 128, 512>}, {pipeline_mode = #tpu.pipeline_mode<synchronous>, transform_indices = @transform_10, window_bounds = array<i64: 1, 512>}, {pipeline_mode = #tpu.pipeline_mode<synchronous>, transform_indices = @transform_11, window_bounds = array<i64: 512, 128>}, {pipeline_mode = #tpu.pipeline_mode<synchronous>, transform_indices = @transform_12, window_bounds = array<i64: 1, 128>}, {transform_indices = @transform_13, window_bounds = array<i64: 1, 16, 128>}]} {
    %c0 = arith.constant 0 : index
    %c0_0 = arith.constant 0 : index
    %c0_1 = arith.constant 0 : index
    %0 = vector.load %arg1[%c0, %c0_0, %c0_1] : memref<1x16x128xf32, #tpu.memory_space<vmem>>, vector<1x16x128xf32>
    %1 = vector.shape_cast %0 : vector<1x16x128xf32> to vector<16x128xf32>
    %c0_2 = arith.constant 0 : index
    %c0_3 = arith.constant 0 : index
    %2 = vector.load %arg2[%c0_2, %c0_3] : memref<1x128xf32, #tpu.memory_space<vmem>>, vector<1x128xf32>
    %c0_4 = arith.constant 0 : index
    %c0_5 = arith.constant 0 : index
    %3 = vector.load %arg3[%c0_4, %c0_5] : memref<1x128xf32, #tpu.memory_space<vmem>>, vector<1x128xf32>
    %cst = arith.constant dense<0.000000e+00> : vector<16xf32>
    %4 = vector.multi_reduction <add>, %1, %cst [1] : vector<16x128xf32> to vector<16xf32>
    %5 = vector.shape_cast %4 : vector<16xf32> to vector<16x1xf32>
    %cst_6 = arith.constant 1.280000e+02 : f32
    %6 = vector.broadcast %cst_6 : f32 to vector<16x1xf32>
    %7 = arith.divf %5, %6 : vector<16x1xf32>
    %8 = vector.broadcast %7 : vector<16x1xf32> to vector<16x128xf32>
    %9 = arith.subf %1, %8 : vector<16x128xf32>
    %10 = arith.mulf %9, %9 : vector<16x128xf32>
    %cst_7 = arith.constant dense<0.000000e+00> : vector<16xf32>
    %11 = vector.multi_reduction <add>, %10, %cst_7 [1] : vector<16x128xf32> to vector<16xf32>
    %12 = vector.shape_cast %11 : vector<16xf32> to vector<16x1xf32>
    %cst_8 = arith.constant 1.280000e+02 : f32
    %13 = vector.broadcast %cst_8 : f32 to vector<16x1xf32>
    %14 = arith.divf %12, %13 : vector<16x1xf32>
    %cst_9 = arith.constant 9.99999974E-6 : f32
    %15 = vector.broadcast %cst_9 : f32 to vector<16x1xf32>
    %16 = arith.addf %14, %15 : vector<16x1xf32>
    %17 = math.rsqrt %16 : vector<16x1xf32>
    %18 = vector.broadcast %17 : vector<16x1xf32> to vector<16x128xf32>
    %19 = arith.mulf %9, %18 : vector<16x128xf32>
    %20 = vector.broadcast %2 : vector<1x128xf32> to vector<16x128xf32>
    %21 = arith.mulf %19, %20 : vector<16x128xf32>
    %22 = vector.broadcast %3 : vector<1x128xf32> to vector<16x128xf32>
    %23 = arith.addf %21, %22 : vector<16x128xf32>
    %24 = arith.truncf %23 : vector<16x128xf32> to vector<16x128xbf16>
    %c0_10 = arith.constant 0 : index
    %c0_11 = arith.constant 0 : index
    %25 = vector.load %arg4[%c0_10, %c0_11] : memref<128x384xbf16, #tpu.memory_space<vmem>>, vector<128x384xbf16>
    %cst_12 = arith.constant dense<0.000000e+00> : vector<16x384xf32>
    %26 = tpu.matmul %24, %25, %cst_12 {dimension_numbers = #tpu.dot_dimension_numbers<[1], [0], [0], [1], [0, 0, 1, 1], [], []>} : vector<16x128xbf16>, vector<128x384xbf16>, vector<16x384xf32> -> vector<16x384xf32>
    %c0_13 = arith.constant 0 : index
    %c0_14 = arith.constant 0 : index
    %27 = vector.load %arg5[%c0_13, %c0_14] : memref<1x384xf32, #tpu.memory_space<vmem>>, vector<1x384xf32>
    %28 = vector.broadcast %27 : vector<1x384xf32> to vector<16x384xf32>
    %29 = arith.addf %26, %28 : vector<16x384xf32>
    %30 = arith.truncf %29 : vector<16x384xf32> to vector<16x384xbf16>
    %31 = vector.shape_cast %30 : vector<16x384xbf16> to vector<1x16x384xbf16>
    %c0_15 = arith.constant 0 : index
    %c0_16 = arith.constant 0 : index
    %c0_17 = arith.constant 0 : index
    %32 = vector.load %arg15[%c0_15, %c0_16, %c0_17] : memref<1x16x384xbf16, #tpu.memory_space<vmem>>, vector<1x16x384xbf16>
    tpu.vector_store %arg15[%c0_15, %c0_16, %c0_17], %31 {strides = array<i32>} : memref<1x16x384xbf16, #tpu.memory_space<vmem>>, vector<1x16x384xbf16>,
    %c0_18 = arith.constant 0 : index
    %c0_19 = arith.constant 0 : index
    %c0_20 = arith.constant 0 : index
    %33 = vector.load %arg15[%c0_18, %c0_19, %c0_20] : memref<1x16x384xbf16, #tpu.memory_space<vmem>>, vector<1x16x32xbf16>
    %c0_21 = arith.constant 0 : index
    %c0_22 = arith.constant 0 : index
    %c128 = arith.constant 128 : index
    %34 = vector.load %arg15[%c0_21, %c0_22, %c128] : memref<1x16x384xbf16, #tpu.memory_space<vmem>>, vector<1x16x32xbf16>
    %c0_23 = arith.constant 0 : index
    %c0_24 = arith.constant 0 : index
    %c256 = arith.constant 256 : index
    %35 = vector.load %arg15[%c0_23, %c0_24, %c256] : memref<1x16x384xbf16, #tpu.memory_space<vmem>>, vector<1x16x32xbf16>
    "tpu.trace_start"() <{level = 10 : i32, message = "bqd,bkd->bqk"}> : () -> ()
    %cst_25 = arith.constant dense<0.000000e+00> : vector<1x16x16xf32>
    %36 = tpu.matmul %33, %34, %cst_25 {dimension_numbers = #tpu.dot_dimension_numbers<[2], [2], [1], [1], [0, 0, 0, 1, 1, 1], [0], [0]>} : vector<1x16x32xbf16>, vector<1x16x32xbf16>, vector<1x16x16xf32> -> vector<1x16x16xf32>
    "tpu.trace_stop"() : () -> ()
    %cst_26 = arith.constant dense<0xFF800000> : vector<1x16xf32>
    %37 = vector.multi_reduction <maximumf>, %36, %cst_26 [2] : vector<1x16x16xf32> to vector<1x16xf32>
    %38 = vector.shape_cast %37 : vector<1x16xf32> to vector<1x16x1xf32>
    %39 = vector.broadcast %38 : vector<1x16x1xf32> to vector<1x16x16xf32>
    %40 = arith.subf %36, %39 : vector<1x16x16xf32>
    %41 = math.exp %40 : vector<1x16x16xf32>
    %cst_27 = arith.constant dense<0.000000e+00> : vector<1x16xf32>
    %42 = vector.multi_reduction <add>, %41, %cst_27 [2] : vector<1x16x16xf32> to vector<1x16xf32>
    %43 = vector.shape_cast %42 : vector<1x16xf32> to vector<1x16x1xf32>
    %44 = tpu.reciprocal %43 {approx = true} : vector<1x16x1xf32> -> vector<1x16x1xf32>
    %45 = vector.broadcast %44 : vector<1x16x1xf32> to vector<1x16x16xf32>
    %46 = arith.mulf %41, %45 : vector<1x16x16xf32>
    %47 = arith.truncf %46 : vector<1x16x16xf32> to vector<1x16x16xbf16>
    "tpu.trace_start"() <{level = 10 : i32, message = "bqk,bkd->bqd"}> : () -> ()
    %cst_28 = arith.constant dense<0.000000e+00> : vector<1x16x32xf32>
    %48 = tpu.matmul %47, %35, %cst_28 {dimension_numbers = #tpu.dot_dimension_numbers<[2], [1], [1], [2], [0, 0, 0, 1, 1, 2], [0], [0]>} : vector<1x16x16xbf16>, vector<1x16x32xbf16>, vector<1x16x32xf32> -> vector<1x16x32xf32>
    "tpu.trace_stop"() : () -> ()
    %49 = arith.truncf %48 : vector<1x16x32xf32> to vector<1x16x32xbf16>
    %c0_29 = arith.constant 0 : index
    %c0_30 = arith.constant 0 : index
    %c0_31 = arith.constant 0 : index
    %50 = vector.load %arg16[%c0_29, %c0_30, %c0_31] : memref<1x16x128xbf16, #tpu.memory_space<vmem>>, vector<1x16x32xbf16>
    tpu.vector_store %arg16[%c0_29, %c0_30, %c0_31], %49 {strides = array<i32>} : memref<1x16x128xbf16, #tpu.memory_space<vmem>>, vector<1x16x32xbf16>,
    %c0_32 = arith.constant 0 : index
    %c0_33 = arith.constant 0 : index
    %c32 = arith.constant 32 : index
    %51 = vector.load %arg15[%c0_32, %c0_33, %c32] : memref<1x16x384xbf16, #tpu.memory_space<vmem>>, vector<1x16x32xbf16>
    %c0_34 = arith.constant 0 : index
    %c0_35 = arith.constant 0 : index
    %c160 = arith.constant 160 : index
    %52 = vector.load %arg15[%c0_34, %c0_35, %c160] : memref<1x16x384xbf16, #tpu.memory_space<vmem>>, vector<1x16x32xbf16>
    %c0_36 = arith.constant 0 : index
    %c0_37 = arith.constant 0 : index
    %c288 = arith.constant 288 : index
    %53 = vector.load %arg15[%c0_36, %c0_37, %c288] : memref<1x16x384xbf16, #tpu.memory_space<vmem>>, vector<1x16x32xbf16>
    "tpu.trace_start"() <{level = 10 : i32, message = "bqd,bkd->bqk"}> : () -> ()
    %cst_38 = arith.constant dense<0.000000e+00> : vector<1x16x16xf32>
    %54 = tpu.matmul %51, %52, %cst_38 {dimension_numbers = #tpu.dot_dimension_numbers<[2], [2], [1], [1], [0, 0, 0, 1, 1, 1], [0], [0]>} : vector<1x16x32xbf16>, vector<1x16x32xbf16>, vector<1x16x16xf32> -> vector<1x16x16xf32>
    "tpu.trace_stop"() : () -> ()
    %cst_39 = arith.constant dense<0xFF800000> : vector<1x16xf32>
    %55 = vector.multi_reduction <maximumf>, %54, %cst_39 [2] : vector<1x16x16xf32> to vector<1x16xf32>
    %56 = vector.shape_cast %55 : vector<1x16xf32> to vector<1x16x1xf32>
    %57 = vector.broadcast %56 : vector<1x16x1xf32> to vector<1x16x16xf32>
    %58 = arith.subf %54, %57 : vector<1x16x16xf32>
    %59 = math.exp %58 : vector<1x16x16xf32>
    %cst_40 = arith.constant dense<0.000000e+00> : vector<1x16xf32>
    %60 = vector.multi_reduction <add>, %59, %cst_40 [2] : vector<1x16x16xf32> to vector<1x16xf32>
    %61 = vector.shape_cast %60 : vector<1x16xf32> to vector<1x16x1xf32>
    %62 = tpu.reciprocal %61 {approx = true} : vector<1x16x1xf32> -> vector<1x16x1xf32>
    %63 = vector.broadcast %62 : vector<1x16x1xf32> to vector<1x16x16xf32>
    %64 = arith.mulf %59, %63 : vector<1x16x16xf32>
    %65 = arith.truncf %64 : vector<1x16x16xf32> to vector<1x16x16xbf16>
    "tpu.trace_start"() <{level = 10 : i32, message = "bqk,bkd->bqd"}> : () -> ()
    %cst_41 = arith.constant dense<0.000000e+00> : vector<1x16x32xf32>
    %66 = tpu.matmul %65, %53, %cst_41 {dimension_numbers = #tpu.dot_dimension_numbers<[2], [1], [1], [2], [0, 0, 0, 1, 1, 2], [0], [0]>} : vector<1x16x16xbf16>, vector<1x16x32xbf16>, vector<1x16x32xf32> -> vector<1x16x32xf32>
    "tpu.trace_stop"() : () -> ()
    %67 = arith.truncf %66 : vector<1x16x32xf32> to vector<1x16x32xbf16>
    %c0_42 = arith.constant 0 : index
    %c0_43 = arith.constant 0 : index
    %c32_44 = arith.constant 32 : index
    %68 = vector.load %arg16[%c0_42, %c0_43, %c32_44] : memref<1x16x128xbf16, #tpu.memory_space<vmem>>, vector<1x16x32xbf16>
    tpu.vector_store %arg16[%c0_42, %c0_43, %c32_44], %67 {strides = array<i32>} : memref<1x16x128xbf16, #tpu.memory_space<vmem>>, vector<1x16x32xbf16>,
    %c0_45 = arith.constant 0 : index
    %c0_46 = arith.constant 0 : index
    %c64 = arith.constant 64 : index
    %69 = vector.load %arg15[%c0_45, %c0_46, %c64] : memref<1x16x384xbf16, #tpu.memory_space<vmem>>, vector<1x16x32xbf16>
    %c0_47 = arith.constant 0 : index
    %c0_48 = arith.constant 0 : index
    %c192 = arith.constant 192 : index
    %70 = vector.load %arg15[%c0_47, %c0_48, %c192] : memref<1x16x384xbf16, #tpu.memory_space<vmem>>, vector<1x16x32xbf16>
    %c0_49 = arith.constant 0 : index
    %c0_50 = arith.constant 0 : index
    %c320 = arith.constant 320 : index
    %71 = vector.load %arg15[%c0_49, %c0_50, %c320] : memref<1x16x384xbf16, #tpu.memory_space<vmem>>, vector<1x16x32xbf16>
    "tpu.trace_start"() <{level = 10 : i32, message = "bqd,bkd->bqk"}> : () -> ()
    %cst_51 = arith.constant dense<0.000000e+00> : vector<1x16x16xf32>
    %72 = tpu.matmul %69, %70, %cst_51 {dimension_numbers = #tpu.dot_dimension_numbers<[2], [2], [1], [1], [0, 0, 0, 1, 1, 1], [0], [0]>} : vector<1x16x32xbf16>, vector<1x16x32xbf16>, vector<1x16x16xf32> -> vector<1x16x16xf32>
    "tpu.trace_stop"() : () -> ()
    %cst_52 = arith.constant dense<0xFF800000> : vector<1x16xf32>
    %73 = vector.multi_reduction <maximumf>, %72, %cst_52 [2] : vector<1x16x16xf32> to vector<1x16xf32>
    %74 = vector.shape_cast %73 : vector<1x16xf32> to vector<1x16x1xf32>
    %75 = vector.broadcast %74 : vector<1x16x1xf32> to vector<1x16x16xf32>
    %76 = arith.subf %72, %75 : vector<1x16x16xf32>
    %77 = math.exp %76 : vector<1x16x16xf32>
    %cst_53 = arith.constant dense<0.000000e+00> : vector<1x16xf32>
    %78 = vector.multi_reduction <add>, %77, %cst_53 [2] : vector<1x16x16xf32> to vector<1x16xf32>
    %79 = vector.shape_cast %78 : vector<1x16xf32> to vector<1x16x1xf32>
    %80 = tpu.reciprocal %79 {approx = true} : vector<1x16x1xf32> -> vector<1x16x1xf32>
    %81 = vector.broadcast %80 : vector<1x16x1xf32> to vector<1x16x16xf32>
    %82 = arith.mulf %77, %81 : vector<1x16x16xf32>
    %83 = arith.truncf %82 : vector<1x16x16xf32> to vector<1x16x16xbf16>
    "tpu.trace_start"() <{level = 10 : i32, message = "bqk,bkd->bqd"}> : () -> ()
    %cst_54 = arith.constant dense<0.000000e+00> : vector<1x16x32xf32>
    %84 = tpu.matmul %83, %71, %cst_54 {dimension_numbers = #tpu.dot_dimension_numbers<[2], [1], [1], [2], [0, 0, 0, 1, 1, 2], [0], [0]>} : vector<1x16x16xbf16>, vector<1x16x32xbf16>, vector<1x16x32xf32> -> vector<1x16x32xf32>
    "tpu.trace_stop"() : () -> ()
    %85 = arith.truncf %84 : vector<1x16x32xf32> to vector<1x16x32xbf16>
    %c0_55 = arith.constant 0 : index
    %c0_56 = arith.constant 0 : index
    %c64_57 = arith.constant 64 : index
    %86 = vector.load %arg16[%c0_55, %c0_56, %c64_57] : memref<1x16x128xbf16, #tpu.memory_space<vmem>>, vector<1x16x32xbf16>
    tpu.vector_store %arg16[%c0_55, %c0_56, %c64_57], %85 {strides = array<i32>} : memref<1x16x128xbf16, #tpu.memory_space<vmem>>, vector<1x16x32xbf16>,
    %c0_58 = arith.constant 0 : index
    %c0_59 = arith.constant 0 : index
    %c96 = arith.constant 96 : index
    %87 = vector.load %arg15[%c0_58, %c0_59, %c96] : memref<1x16x384xbf16, #tpu.memory_space<vmem>>, vector<1x16x32xbf16>
    %c0_60 = arith.constant 0 : index
    %c0_61 = arith.constant 0 : index
    %c224 = arith.constant 224 : index
    %88 = vector.load %arg15[%c0_60, %c0_61, %c224] : memref<1x16x384xbf16, #tpu.memory_space<vmem>>, vector<1x16x32xbf16>
    %c0_62 = arith.constant 0 : index
    %c0_63 = arith.constant 0 : index
    %c352 = arith.constant 352 : index
    %89 = vector.load %arg15[%c0_62, %c0_63, %c352] : memref<1x16x384xbf16, #tpu.memory_space<vmem>>, vector<1x16x32xbf16>
    "tpu.trace_start"() <{level = 10 : i32, message = "bqd,bkd->bqk"}> : () -> ()
    %cst_64 = arith.constant dense<0.000000e+00> : vector<1x16x16xf32>
    %90 = tpu.matmul %87, %88, %cst_64 {dimension_numbers = #tpu.dot_dimension_numbers<[2], [2], [1], [1], [0, 0, 0, 1, 1, 1], [0], [0]>} : vector<1x16x32xbf16>, vector<1x16x32xbf16>, vector<1x16x16xf32> -> vector<1x16x16xf32>
    "tpu.trace_stop"() : () -> ()
    %cst_65 = arith.constant dense<0xFF800000> : vector<1x16xf32>
    %91 = vector.multi_reduction <maximumf>, %90, %cst_65 [2] : vector<1x16x16xf32> to vector<1x16xf32>
    %92 = vector.shape_cast %91 : vector<1x16xf32> to vector<1x16x1xf32>
    %93 = vector.broadcast %92 : vector<1x16x1xf32> to vector<1x16x16xf32>
    %94 = arith.subf %90, %93 : vector<1x16x16xf32>
    %95 = math.exp %94 : vector<1x16x16xf32>
    %cst_66 = arith.constant dense<0.000000e+00> : vector<1x16xf32>
    %96 = vector.multi_reduction <add>, %95, %cst_66 [2] : vector<1x16x16xf32> to vector<1x16xf32>
    %97 = vector.shape_cast %96 : vector<1x16xf32> to vector<1x16x1xf32>
    %98 = tpu.reciprocal %97 {approx = true} : vector<1x16x1xf32> -> vector<1x16x1xf32>
    %99 = vector.broadcast %98 : vector<1x16x1xf32> to vector<1x16x16xf32>
    %100 = arith.mulf %95, %99 : vector<1x16x16xf32>
    %101 = arith.truncf %100 : vector<1x16x16xf32> to vector<1x16x16xbf16>
    "tpu.trace_start"() <{level = 10 : i32, message = "bqk,bkd->bqd"}> : () -> ()
    %cst_67 = arith.constant dense<0.000000e+00> : vector<1x16x32xf32>
    %102 = tpu.matmul %101, %89, %cst_67 {dimension_numbers = #tpu.dot_dimension_numbers<[2], [1], [1], [2], [0, 0, 0, 1, 1, 2], [0], [0]>} : vector<1x16x16xbf16>, vector<1x16x32xbf16>, vector<1x16x32xf32> -> vector<1x16x32xf32>
    "tpu.trace_stop"() : () -> ()
    %103 = arith.truncf %102 : vector<1x16x32xf32> to vector<1x16x32xbf16>
    %c0_68 = arith.constant 0 : index
    %c0_69 = arith.constant 0 : index
    %c96_70 = arith.constant 96 : index
    %104 = vector.load %arg16[%c0_68, %c0_69, %c96_70] : memref<1x16x128xbf16, #tpu.memory_space<vmem>>, vector<1x16x32xbf16>
    tpu.vector_store %arg16[%c0_68, %c0_69, %c96_70], %103 {strides = array<i32>} : memref<1x16x128xbf16, #tpu.memory_space<vmem>>, vector<1x16x32xbf16>,
    %c0_71 = arith.constant 0 : index
    %c0_72 = arith.constant 0 : index
    %c0_73 = arith.constant 0 : index
    %105 = vector.load %arg16[%c0_71, %c0_72, %c0_73] : memref<1x16x128xbf16, #tpu.memory_space<vmem>>, vector<1x16x128xbf16>
    %106 = vector.shape_cast %105 : vector<1x16x128xbf16> to vector<16x128xbf16>
    %c0_74 = arith.constant 0 : index
    %c0_75 = arith.constant 0 : index
    %107 = vector.load %arg6[%c0_74, %c0_75] : memref<128x128xbf16, #tpu.memory_space<vmem>>, vector<128x128xbf16>
    %cst_76 = arith.constant dense<0.000000e+00> : vector<16x128xf32>
    %108 = tpu.matmul %106, %107, %cst_76 {dimension_numbers = #tpu.dot_dimension_numbers<[1], [0], [0], [1], [0, 0, 1, 1], [], []>} : vector<16x128xbf16>, vector<128x128xbf16>, vector<16x128xf32> -> vector<16x128xf32>
    %109 = arith.addf %1, %108 : vector<16x128xf32>
    %c0_77 = arith.constant 0 : index
    %c0_78 = arith.constant 0 : index
    %110 = vector.load %arg7[%c0_77, %c0_78] : memref<1x128xf32, #tpu.memory_space<vmem>>, vector<1x128xf32>
    %111 = vector.broadcast %110 : vector<1x128xf32> to vector<16x128xf32>
    %112 = arith.addf %109, %111 : vector<16x128xf32>
    %c0_79 = arith.constant 0 : index
    %c0_80 = arith.constant 0 : index
    %113 = vector.load %arg8[%c0_79, %c0_80] : memref<1x128xf32, #tpu.memory_space<vmem>>, vector<1x128xf32>
    %c0_81 = arith.constant 0 : index
    %c0_82 = arith.constant 0 : index
    %114 = vector.load %arg9[%c0_81, %c0_82] : memref<1x128xf32, #tpu.memory_space<vmem>>, vector<1x128xf32>
    %cst_83 = arith.constant dense<0.000000e+00> : vector<16xf32>
    %115 = vector.multi_reduction <add>, %112, %cst_83 [1] : vector<16x128xf32> to vector<16xf32>
    %116 = vector.shape_cast %115 : vector<16xf32> to vector<16x1xf32>
    %cst_84 = arith.constant 1.280000e+02 : f32
    %117 = vector.broadcast %cst_84 : f32 to vector<16x1xf32>
    %118 = arith.divf %116, %117 : vector<16x1xf32>
    %119 = vector.broadcast %118 : vector<16x1xf32> to vector<16x128xf32>
    %120 = arith.subf %112, %119 : vector<16x128xf32>
    %121 = arith.mulf %120, %120 : vector<16x128xf32>
    %cst_85 = arith.constant dense<0.000000e+00> : vector<16xf32>
    %122 = vector.multi_reduction <add>, %121, %cst_85 [1] : vector<16x128xf32> to vector<16xf32>
    %123 = vector.shape_cast %122 : vector<16xf32> to vector<16x1xf32>
    %cst_86 = arith.constant 1.280000e+02 : f32
    %124 = vector.broadcast %cst_86 : f32 to vector<16x1xf32>
    %125 = arith.divf %123, %124 : vector<16x1xf32>
    %cst_87 = arith.constant 9.99999974E-6 : f32
    %126 = vector.broadcast %cst_87 : f32 to vector<16x1xf32>
    %127 = arith.addf %125, %126 : vector<16x1xf32>
    %128 = math.rsqrt %127 : vector<16x1xf32>
    %129 = vector.broadcast %128 : vector<16x1xf32> to vector<16x128xf32>
    %130 = arith.mulf %120, %129 : vector<16x128xf32>
    %131 = vector.broadcast %113 : vector<1x128xf32> to vector<16x128xf32>
    %132 = arith.mulf %130, %131 : vector<16x128xf32>
    %133 = vector.broadcast %114 : vector<1x128xf32> to vector<16x128xf32>
    %134 = arith.addf %132, %133 : vector<16x128xf32>
    %135 = arith.truncf %134 : vector<16x128xf32> to vector<16x128xbf16>
    %c0_88 = arith.constant 0 : index
    %c0_89 = arith.constant 0 : index
    %136 = vector.load %arg10[%c0_88, %c0_89] : memref<128x512xbf16, #tpu.memory_space<vmem>>, vector<128x512xbf16>
    %cst_90 = arith.constant dense<0.000000e+00> : vector<16x512xf32>
    %137 = tpu.matmul %135, %136, %cst_90 {dimension_numbers = #tpu.dot_dimension_numbers<[1], [0], [0], [1], [0, 0, 1, 1], [], []>} : vector<16x128xbf16>, vector<128x512xbf16>, vector<16x512xf32> -> vector<16x512xf32>
    %c0_91 = arith.constant 0 : index
    %c0_92 = arith.constant 0 : index
    %138 = vector.load %arg11[%c0_91, %c0_92] : memref<1x512xf32, #tpu.memory_space<vmem>>, vector<1x512xf32>
    %139 = vector.broadcast %138 : vector<1x512xf32> to vector<16x512xf32>
    %140 = arith.addf %137, %139 : vector<16x512xf32>
    %cst_93 = arith.constant -1.702000e+00 : f32
    %141 = vector.broadcast %cst_93 : f32 to vector<16x512xf32>
    %142 = arith.mulf %141, %140 : vector<16x512xf32>
    %143 = math.exp %142 : vector<16x512xf32>
    %cst_94 = arith.constant 1.000000e+00 : f32
    %144 = vector.broadcast %cst_94 : f32 to vector<16x512xf32>
    %145 = arith.addf %144, %143 : vector<16x512xf32>
    %146 = tpu.reciprocal %145 {approx = true} : vector<16x512xf32> -> vector<16x512xf32>
    %147 = arith.mulf %140, %146 : vector<16x512xf32>
    %148 = arith.truncf %147 : vector<16x512xf32> to vector<16x512xbf16>
    %c0_95 = arith.constant 0 : index
    %c0_96 = arith.constant 0 : index
    %149 = vector.load %arg12[%c0_95, %c0_96] : memref<512x128xbf16, #tpu.memory_space<vmem>>, vector<512x128xbf16>
    %cst_97 = arith.constant dense<0.000000e+00> : vector<16x128xf32>
    %150 = tpu.matmul %148, %149, %cst_97 {dimension_numbers = #tpu.dot_dimension_numbers<[1], [0], [0], [1], [0, 0, 1, 1], [], []>} : vector<16x512xbf16>, vector<512x128xbf16>, vector<16x128xf32> -> vector<16x128xf32>
    %c0_98 = arith.constant 0 : index
    %c0_99 = arith.constant 0 : index
    %151 = vector.load %arg13[%c0_98, %c0_99] : memref<1x128xf32, #tpu.memory_space<vmem>>, vector<1x128xf32>
    %152 = vector.broadcast %151 : vector<1x128xf32> to vector<16x128xf32>
    %153 = arith.addf %150, %152 : vector<16x128xf32>
    %154 = arith.addf %112, %153 : vector<16x128xf32>
    %155 = vector.shape_cast %154 : vector<16x128xf32> to vector<1x16x128xf32>
    %c0_100 = arith.constant 0 : index
    %c0_101 = arith.constant 0 : index
    %c0_102 = arith.constant 0 : index
    %156 = vector.load %arg14[%c0_100, %c0_101, %c0_102] : memref<1x16x128xf32, #tpu.memory_space<vmem>>, vector<1x16x128xf32>
    tpu.vector_store %arg14[%c0_100, %c0_101, %c0_102], %155 {strides = array<i32>} : memref<1x16x128xf32, #tpu.memory_space<vmem>>, vector<1x16x128xf32>,
    return
  }
  func.func @transform_0(%arg0: i32) -> (i32, i32, i32) {
    %c0_i32 = arith.constant 0 : i32
    %c0_i32_0 = arith.constant 0 : i32
    %c0_i32_1 = arith.constant 0 : i32
    return %arg0, %c0_i32, %c0_i32_0 : i32, i32, i32
  }
  func.func @transform_1(%arg0: i32) -> (i32, i32) {
    %c0_i32 = arith.constant 0 : i32
    %c0_i32_0 = arith.constant 0 : i32
    %c0_i32_1 = arith.constant 0 : i32
    return %c0_i32, %c0_i32_0 : i32, i32
  }
  func.func @transform_2(%arg0: i32) -> (i32, i32) {
    %c0_i32 = arith.constant 0 : i32
    %c0_i32_0 = arith.constant 0 : i32
    %c0_i32_1 = arith.constant 0 : i32
    return %c0_i32, %c0_i32_0 : i32, i32
  }
  func.func @transform_3(%arg0: i32) -> (i32, i32) {
    %c0_i32 = arith.constant 0 : i32
    %c0_i32_0 = arith.constant 0 : i32
    %c0_i32_1 = arith.constant 0 : i32
    return %c0_i32, %c0_i32_0 : i32, i32
  }
  func.func @transform_4(%arg0: i32) -> (i32, i32) {
    %c0_i32 = arith.constant 0 : i32
    %c0_i32_0 = arith.constant 0 : i32
    %c0_i32_1 = arith.constant 0 : i32
    return %c0_i32, %c0_i32_0 : i32, i32
  }
  func.func @transform_5(%arg0: i32) -> (i32, i32) {
    %c0_i32 = arith.constant 0 : i32
    %c0_i32_0 = arith.constant 0 : i32
    %c0_i32_1 = arith.constant 0 : i32
    return %c0_i32, %c0_i32_0 : i32, i32
  }
  func.func @transform_6(%arg0: i32) -> (i32, i32) {
    %c0_i32 = arith.constant 0 : i32
    %c0_i32_0 = arith.constant 0 : i32
    %c0_i32_1 = arith.constant 0 : i32
    return %c0_i32, %c0_i32_0 : i32, i32
  }
  func.func @transform_7(%arg0: i32) -> (i32, i32) {
    %c0_i32 = arith.constant 0 : i32
    %c0_i32_0 = arith.constant 0 : i32
    %c0_i32_1 = arith.constant 0 : i32
    return %c0_i32, %c0_i32_0 : i32, i32
  }
  func.func @transform_8(%arg0: i32) -> (i32, i32) {
    %c0_i32 = arith.constant 0 : i32
    %c0_i32_0 = arith.constant 0 : i32
    %c0_i32_1 = arith.constant 0 : i32
    return %c0_i32, %c0_i32_0 : i32, i32
  }
  func.func @transform_9(%arg0: i32) -> (i32, i32) {
    %c0_i32 = arith.constant 0 : i32
    %c0_i32_0 = arith.constant 0 : i32
    %c0_i32_1 = arith.constant 0 : i32
    return %c0_i32, %c0_i32_0 : i32, i32
  }
  func.func @transform_10(%arg0: i32) -> (i32, i32) {
    %c0_i32 = arith.constant 0 : i32
    %c0_i32_0 = arith.constant 0 : i32
    %c0_i32_1 = arith.constant 0 : i32
    return %c0_i32, %c0_i32_0 : i32, i32
  }
  func.func @transform_11(%arg0: i32) -> (i32, i32) {
    %c0_i32 = arith.constant 0 : i32
    %c0_i32_0 = arith.constant 0 : i32
    %c0_i32_1 = arith.constant 0 : i32
    return %c0_i32, %c0_i32_0 : i32, i32
  }
  func.func @transform_12(%arg0: i32) -> (i32, i32) {
    %c0_i32 = arith.constant 0 : i32
    %c0_i32_0 = arith.constant 0 : i32
    %c0_i32_1 = arith.constant 0 : i32
    return %c0_i32, %c0_i32_0 : i32, i32
  }
  func.func @transform_13(%arg0: i32) -> (i32, i32, i32) {
    %c0_i32 = arith.constant 0 : i32
    %c0_i32_0 = arith.constant 0 : i32
    %c0_i32_1 = arith.constant 0 : i32
    return %arg0, %c0_i32, %c0_i32_0 : i32, i32, i32
  }
}

</mosaic_0001>

<bundles_post_ra>
// kernel: tpu_custom_call.1
= control target key start
LH: loop header
LB: loop body
LE: loop exit
PB: predicated region body
PF: predicated region fallthrough
CT: control target
= control target key end

     0   :  { %s3880_s0 = inlined_call_operand.hbm [shape: f32[2,16,128], index: 0, kind: input, shape index: {}]   ;;  %s3881_s1 = inlined_call_operand.hbm [shape: f32[1,128], index: 1, kind: input, shape index: {}]   ;;  %s3882_s2 = inlined_call_operand.hbm [shape: f32[1,128], index: 2, kind: input, shape index: {}]   ;;  %s3883_s3 = inlined_call_operand.hbm [shape: bf16[128,384], index: 3, kind: input, shape index: {}]   ;;  %s3884_s4 = inlined_call_operand.vmem [shape: f32[1,384], index: 4, kind: input, shape index: {}]   ;;  %s3885_s5 = inlined_call_operand.hbm [shape: bf16[128,128], index: 5, kind: input, shape index: {}]   ;;  %s3886_s6 = inlined_call_operand.hbm [shape: f32[1,128], index: 6, kind: input, shape index: {}]   ;;  %s3887_s7 = inlined_call_operand.hbm [shape: f32[1,128], index: 7, kind: input, shape index: {}]   ;;  %s3888_s8 = inlined_call_operand.hbm [shape: f32[1,128], index: 8, kind: input, shape index: {}]   ;;  %s3889_s9 = inlined_call_operand.hbm [shape: bf16[128,512], index: 9, kind: input, shape index: {}]   ;;  %s3890_s10 = inlined_call_operand.vmem [shape: f32[1,512], index: 10, kind: input, shape index: {}]   ;;  %s3891_s11 = inlined_call_operand.hbm [shape: bf16[512,128], index: 11, kind: input, shape index: {}]   ;;  %s3892_s12 = inlined_call_operand.vmem [shape: f32[1,128], index: 12, kind: input, shape index: {}]   ;;  %s3893_s13 = inlined_call_operand.hbm [shape: f32[2,16,128], index: 13, kind: output, shape index: {}]  }
   0x1   :  { %3895 = sst [smem:[#allocation29_spill]] %s3881_s1 }
   0x2   :  { %3896 = sst [smem:[#allocation30_spill]] %s3882_s2 }
   0x3   :  { %3897 = sst [smem:[#allocation31_spill]] %s3883_s3 }
   0x4   :  { %3898 = sst [smem:[#allocation32_spill]] %s3885_s5 }
   0x5   :  { %3899 = sst [smem:[#allocation33_spill]] %s3886_s6 }
   0x6   :  { %3900 = sst [smem:[#allocation34_spill]] %s3890_s10 }
   0x7   :  { %3901 = sst [smem:[#allocation35_spill]] %s3892_s12 }
   0x8   :  { %3902 = sst [smem:[#allocation36_spill]] %s3893_s13 }
   0x9   :  { %18 = vsyncpa [#allocation5], 0 }
   0xa   :  { %20 = vsyncpa [#allocation5 + $0x1], 0 }
   0xb   :  { %21 = vsyncpa [#allocation8], 0 }
   0xc   :  { %22 = vsyncpa [#allocation11], 0 }
   0xd   :  { %23 = vsyncpa [#allocation14], 0 }
   0xe   :  { %24 = vsyncpa [#allocation17], 0 }
   0xf   :  { %25 = vsyncpa [#allocation20], 0 }
  0x10   :  { %26 = vsyncpa [#allocation6], 0 }
  0x11   :  { %28 = vsyncpa [#allocation6 + $0x1], 0  ;;  %s3548_s25 = smov 0   ;;  %s3550_s26 = smov 0  }
  0x12   :  { %s3552_s27 = smov 0   ;;  %s3554_s28 = smov 0  }
  0x13 LB: > { %s3903_s1 = sld [smem:[#allocation29_spill]]  ;;  %s3572_s15 = sadd.s32 4294967295, %s3453_s28   ;;  %s3453_s28 = sphi %s3554_s28, %s3922_s28   ;;  %s3449_s27 = sphi %s3552_s27, %s3921_s27   ;;  %s3445_s26 = sphi %s3550_s26, %s3920_s26   ;;  %s3441_s25 = sphi %s3548_s25, %s3919_s25  }
  0x14   : > { %p2250_p0 = scmp.ge.s32.totalorder %s3453_s28, 1  ;;  %p55_p1 = scmp.eq.s32.totalorder %s3572_s15, 0 }
  0x15   : > { %p343_p2 = scmp.lt.s32.totalorder %s3453_s28, 3  ;;  %s3455_s17 = smov [#allocation7]  }
  0x16   : > { %s357_s18 = sshll.u32 %s3455_s17, 4  ;;  %s3905_s3 = sld [smem:[#allocation31_spill]]  ;;  %s358_s18 = int_to_ptr.vmem [resolvable:$true] %s357_s18 }
  0x17   : > { %p3577_p3 = pnand %p2250_p0, %p343_p2  ;;  %s3456_s23 = smov [#allocation10]  }
  0x18   : > { %s380_s24 = sshll.u32 %s3456_s23, 4  ;;  %s3457_s29 = smov 192   ;;  %s381_s24 = int_to_ptr.vmem [resolvable:$true] %s380_s24 }
  0x19   : > { %s355_s14 = sshll.u32 %s3903_s1, 4  ;;  %p2876_p5 = pneg %p3577_p3  ;;  %s356_s14 = int_to_ptr.hbm [resolvable:$true] %s355_s14 }
  0x1a   : > { %s3458_s30 = smov 12   ;;  %s3907_s6 = sld [smem:[#allocation33_spill]] }
  0x1b   : > { %p3589_p6 = pnand %p2876_p5, %p55_p1  ;;  %s3459_s1 = smov [#allocation13]  }
  0x1c   : > { %s378_s21 = sshll.u32 %s3905_s3, 4  ;;  %s412_s3 = sshll.u32 %s3459_s1, 4  ;;  %s379_s21 = int_to_ptr.hbm [resolvable:$true] %s378_s21  ;;  %s413_s3 = int_to_ptr.vmem [resolvable:$true] %s412_s3 }
  0x1d   : > { %2879 = dma.hbm_to_vmem [thread:$0]  (!%p3589_p6), %s356_s14, 16, %s358_s18, [#allocation8]  }
  0x1e   : > { %2885 = dma.hbm_to_vmem [thread:$0]  (!%p3589_p6), %s379_s21, 3072, %s381_s24, [#allocation11], %s3457_s29, %s3457_s29, %s3458_s30  }
  0x1f   : > { %s434_s23 = sshll.u32 %s3888_s8, 4  ;;  %s3460_s14 = smov [#allocation16]   ;;  %s435_s23 = int_to_ptr.hbm [resolvable:$true] %s434_s23 }
  0x20   : > { %s410_s20 = sshll.u32 %s3907_s6, 4  ;;  %s436_s18 = sshll.u32 %s3460_s14, 4  ;;  %s411_s20 = int_to_ptr.hbm [resolvable:$true] %s410_s20  ;;  %s437_s18 = int_to_ptr.vmem [resolvable:$true] %s436_s18 }
  0x21   : > { %2891 = dma.hbm_to_vmem [thread:$0]  (!%p3589_p6), %s411_s20, 16, %s413_s3, [#allocation14]  }
  0x22   : > { %s3908_s2 = sld [smem:[#allocation30_spill]]  ;;  %s3461_s12 = smov [#allocation9]  }
  0x23   : > { %2897 = dma.hbm_to_vmem [thread:$0]  (!%p3589_p6), %s435_s23, 16, %s437_s18, [#allocation17]  }
  0x24   : > { %s3909_s5 = sld [smem:[#allocation32_spill]]  ;;  %s369_s13 = sshll.u32 %s3461_s12, 4  ;;  %s370_s13 = int_to_ptr.vmem [resolvable:$true] %s369_s13 }
  0x25   : > { %s3462_s3 = smov [#allocation12]   ;;  %s3463_s10 = smov 64  }
  0x26   : > { %s397_s17 = sshll.u32 %s3462_s3, 4  ;;  %s3464_s19 = smov 4   ;;  %s398_s17 = int_to_ptr.vmem [resolvable:$true] %s397_s17 }
  0x27   : > { %s422_s14 = sshll.u32 %s3887_s7, 4  ;;  %s3465_s18 = smov [#allocation15]   ;;  %s423_s14 = int_to_ptr.hbm [resolvable:$true] %s422_s14 }
  0x28   : > { %s367_s24 = sshll.u32 %s3908_s2, 4  ;;  %s424_s21 = sshll.u32 %s3465_s18, 4  ;;  %s368_s24 = int_to_ptr.hbm [resolvable:$true] %s367_s24  ;;  %s425_s21 = int_to_ptr.vmem [resolvable:$true] %s424_s21 }
  0x29   : > { %2882 = dma.hbm_to_vmem [thread:$0]  (!%p3589_p6), %s368_s24, 16, %s370_s13, [#allocation8]  }
  0x2a   : > { %s395_s30 = sshll.u32 %s3909_s5, 4  ;;  %s445_s24 = sshll.u32 %s3889_s9, 4  ;;  %s396_s30 = int_to_ptr.hbm [resolvable:$true] %s395_s30  ;;  %s446_s24 = int_to_ptr.hbm [resolvable:$true] %s445_s24 }
  0x2b   : > { %2888 = dma.hbm_to_vmem [thread:$0]  (!%p3589_p6), %s396_s30, 1024, %s398_s17, [#allocation11], %s3463_s10, %s3463_s10, %s3464_s19  }
  0x2c   : > { %2894 = dma.hbm_to_vmem [thread:$0]  (!%p3589_p6), %s423_s14, 16, %s425_s21, [#allocation14]  }
  0x2d   : > { %s3466_s30 = smov [#allocation18]   ;;  %s3467_s13 = smov 256  }
  0x2e   : > { %s447_s12 = sshll.u32 %s3466_s30, 4  ;;  %s3468_s3 = smov 16   ;;  %s448_s12 = int_to_ptr.vmem [resolvable:$true] %s447_s12 }
  0x2f   : > { %2900 = dma.hbm_to_vmem [thread:$0]  (!%p3589_p6), %s446_s24, 4096, %s448_s12, [#allocation17], %s3467_s13, %s3467_s13, %s3468_s3  }
  0x30   : > { %s462_s23 = sshll.u32 %s3891_s11, 4  ;;  %s3469_s14 = smov [#allocation19]   ;;  %s463_s23 = int_to_ptr.hbm [resolvable:$true] %s462_s23 }
  0x31   : > { %s464_s18 = sshll.u32 %s3469_s14, 4  ;;  %s2249_s21 = sadd.s32 4294967294, %s3453_s28   ;;  %s465_s18 = int_to_ptr.vmem [resolvable:$true] %s464_s18 }
  0x32   : > { %2903 = dma.hbm_to_vmem [thread:$0]  (!%p3589_p6), %s463_s23, 4096, %s465_s18, [#allocation20], %s3463_s10, %s3463_s10, %s3464_s19  }
  0x33   : > { %s3634_s1 = sadd.s32 1, %s3453_s28   ;;  %s41_s29 = sadd.s32 1, %s3449_s27 }
  0x34   : > { %s38_s24 = ssub.s32 %s3453_s28, %s3634_s1  ;;  %p48_p7 = scmp.ne.s32.totalorder %s3449_s27, %s3445_s26 }
  0x35   : > { %p39_p8 = scmp.eq.s32.totalorder %s38_s24, 0  ;;  %p49_p9 = scmp.eq.s32.totalorder %s3453_s28, 0 }
  0x36   : > { %p54_p10 = scmp.ne.s32.totalorder %s3445_s26, %s3441_s25  ;;  %p330_p11 = scmp.eq.s32.totalorder %s3572_s15, 1 }
  0x37   : > { %s3646_s30 = scalar_select %p39_p8, %s3449_s27, %s41_s29  }
  0x38   : > { %p3648_p12 = por %p49_p9, %p48_p7  ;;  %p3654_p13 = por %p55_p1, %p54_p10 }
  0x39   : > { %p3658_p0 = por %p330_p11, %p48_p7  ;;  %p336_p2 = scmp.eq.s32.totalorder %s2249_s21, 1 }
  0x3a   : > { %p2921_p5 = scmp.lt.s32.totalorder %s3453_s28, 2  ;;  %s481_s19 = sand.u32 1, %s3449_s27  }
  0x3b   : > { %p3664_p6 = por %p336_p2, %p54_p10  ;;  %s2261_s3 = sshll.u32 %s481_s19, 4 }
  0x3c   : > { %s2725_s17 = sshll.u32 %s3453_s28, 4  ;;  %s485_s29 = scalar_lea.vmem [#allocation4], %s2261_s3 }
  0x3d   : > { %s490_s14 = scalar_lea.hbm %s3880_s0, %s2725_s17  ;;  %s493_s24 = sshll.u32 %s485_s29, 4  ;;  %s494_s24 = int_to_ptr.vmem [resolvable:$true] %s493_s24 }
  0x3e   : > { %s491_s18 = sshll.u32 %s490_s14, 4  ;;  %p3674_p7 = pnand %p2921_p5, %p3648_p12  ;;  %s492_s18 = int_to_ptr.hbm [resolvable:$true] %s491_s18 }
  0x3f   : > { %s482_s2 = scalar_lea.sflag [#allocation5], %s481_s19  ;;  %s3337_s5 = sshra.s32 %s492_s18, 4  ;;  %s3338_s5 = int_to_ptr.hbm [resolvable:$true] %s3337_s5 }
  0x40   : > { %s3339_s6 = scalar_lea.hbm %s3338_s5, 16  ;;  %p3341_p9 = pneg %p3674_p7 }
  0x41   : > { %p3340_p8 = scmp.ne.s32.totalorder %s3338_s5, %s3339_s6  ;;  %s3344_s20 = scalar_lea.hbm %s3880_s0, 32 }
  0x42   : > { %p3345_p12 = scmp.lt.s32.totalorder %s3338_s5, %s3880_s0  ;;  %p3346_p2 = scmp.lt.s32.totalorder %s3344_s20, %s3339_s6 }
  0x43   : > { %p3342_p10 = pnand %p3341_p9, %p3340_p8 }
  0x44   : > { %p3347_p5 = por %p3346_p2, %p3345_p12 }
  0x45   : > { %p3343_p11 = pneg %p3342_p10 }
  0x47   : > { %p3348_p4 = pnand %p3347_p5, %p3343_p11 }
  0x49   : > { %3351 = shalt.err (!%p3348_p4)
}
  0x4a   : > { %s3470_s19 = smov 128   ;;  %s3471_s14 = smov 8  }
  0x4b   : > { %2907 = dma.hbm_to_vmem [thread:$0]  (!%p3674_p7), %s492_s18, 256, %s494_s24, %s482_s2, %s3470_s19, %s3470_s19, %s3471_s14  }
  0x4c   : > { %505 = sbr.rel (%p3577_p3) target bundleno = 2347 (0x92b), region = 72  ;;  %s3691_s29 = sand.u32 (!%p3577_p3), 1, %s3445_s26  }
  0x4d   : > { %s2265_s5 = sshll.u32 (!%p3577_p3), %s3691_s29, 4  ;;  %s508_s6 = scalar_lea.sflag (!%p3577_p3), [#allocation5], %s3691_s29 }
  0x4e   : > { %s511_s17 = scalar_lea.vmem (!%p3577_p3), [#allocation4], %s2265_s5 }
  0x51   : > { %3412 = dma.done.wait (%p3654_p13), %s508_s6, 256  }
  0x52   : > { %3414 = vsyncadd (%p3654_p13), %s508_s6, 4294967040 }
  0x53   : > { %3416 = dma.done.wait (%p55_p1), [#allocation8], 32  }
  0x54   : > { %3418 = vsyncadd (%p55_p1), [#allocation8], 4294967264 }
  0x55   : > { %3420 = dma.done.wait (%p55_p1), [#allocation11], 4096  }
  0x56   : > { %3422 = vsyncadd (%p55_p1), [#allocation11], 4294963200 }
  0x57   : > { %3424 = dma.done.wait (%p55_p1), [#allocation14], 32  }
  0x58   : > { %3426 = vsyncadd (%p55_p1), [#allocation14], 4294967264 }
  0x59   : > { %3428 = dma.done.wait (%p55_p1), [#allocation17], 4112  }
  0x5a   : > { %3430 = vsyncadd (%p55_p1), [#allocation17], 4294963184 }
  0x5b   : > { %3432 = dma.done.wait (%p55_p1), [#allocation20], 4096  }
  0x5c   : > { %3434 = vsyncadd (%p55_p1), [#allocation20], 4294963200  ;;  %v3721_v0 = vld [vmem:[%s511_s17] sm:$0xff]  ;;  %v3724_v1 = vld [vmem:[%s511_s17 + $0x8] sm:$0xff]  ;;  %v3472_v2 = vmov 128.0   ;;  %vm897_vm7 = vcmask 261120  }
  0x5d   : > { %605 = vadd.xlane.f32.xlu0 %v3721_v0  ;;  %2993 = vrcp.f32 %v3472_v2  ;;  %v2362_v17 = vld [vmem:[#allocation10 + $0xa8] sm:$0xf]  ;;  %v2748_v18 = vld [vmem:[#allocation10 + $0xb0] sm:$0xf0]  ;;  %v2747_v19 = vld [vmem:[#allocation10 + $0xac] sm:$0xf] }
  0x5e   : > { %v2363_v20 = vor.u32 %v2748_v18, %v2362_v17  ;;  %v2364_v21 = vld [vmem:[#allocation10 + $0xb4] sm:$0xf0]  ;;  %v2370_v22 = vld [vmem:[#allocation10 + $0xb0] sm:$0xf]  ;;  %v2749_v23 = vld [vmem:[#allocation10 + $0xb8] sm:$0xf0] }
  0x5f   : > { %v2367_v24 = vor.u32 %v2747_v19, %v2364_v21  ;;  %v2371_v25 = vor.u32 %v2749_v23, %v2370_v22  ;;  %v2350_v26 = vld [vmem:[#allocation10 + $0x90] sm:$0xf]  ;;  %v2745_v27 = vld [vmem:[#allocation10 + $0x98] sm:$0xf0]  ;;  %v2744_v28 = vld [vmem:[#allocation10 + $0x94] sm:$0xf] }
  0x60   : > { %831 = vmatpush.bf16.msra.mxu0 %v2363_v20  ;;  %v2351_v29 = vor.u32 %v2745_v27, %v2350_v26  ;;  %v2352_v30 = vld [vmem:[#allocation10 + $0x9c] sm:$0xf0]  ;;  %v2358_v31 = vld [vmem:[#allocation10 + $0x98] sm:$0xf]  ;;  %v2746_v32 = vld [vmem:[#allocation10 + $0xa0] sm:$0xf0] }
  0x61   : > { %845 = vmatpush.bf16.msra.mxu1 %v2367_v24  ;;  %859 = vmatpush.bf16.msra.mxu2 %v2371_v25  ;;  %v2355_v33 = vor.u32 %v2744_v28, %v2352_v30  ;;  %v2359_v34 = vor.u32 %v2746_v32, %v2358_v31  ;;  %v2338_v35 = vld [vmem:[#allocation10 + $0x78] sm:$0xf]  ;;  %v2742_v36 = vld [vmem:[#allocation10 + $0x80] sm:$0xf0]  ;;  %v2741_v37 = vld [vmem:[#allocation10 + $0x7c] sm:$0xf] }
  0x62   : > { %v2339_v38 = vor.u32 %v2742_v36, %v2338_v35  ;;  %v2340_v39 = vld [vmem:[#allocation10 + $0x84] sm:$0xf0]  ;;  %v2346_v40 = vld [vmem:[#allocation10 + $0x80] sm:$0xf]  ;;  %v2743_v41 = vld [vmem:[#allocation10 + $0x88] sm:$0xf0] }
  0x63   : > { %v2994_v3 = vpop.eup %2993  ;;  %v2343_v42 = vor.u32 %v2741_v37, %v2340_v39  ;;  %v2347_v43 = vor.u32 %v2743_v41, %v2346_v40  ;;  %v2326_v44 = vld [vmem:[#allocation10 + $0x60] sm:$0xf]  ;;  %v2739_v45 = vld [vmem:[#allocation10 + $0x68] sm:$0xf0]  ;;  %v2738_v46 = vld [vmem:[#allocation10 + $0x64] sm:$0xf] }
  0x64   : > { %v610_v4 = vmul.f32 128.0, %v2994_v3  ;;  %vm614_vm0 = vweird.f32 %v2994_v3  ;;  %832 = vmatpush.bf16.msra.mxu0 %v2351_v29  ;;  %v2327_v47 = vor.u32 %v2739_v45, %v2326_v44  ;;  %v2328_v48 = vld [vmem:[#allocation10 + $0x6c] sm:$0xf0]  ;;  %v2334_v49 = vld [vmem:[#allocation10 + $0x68] sm:$0xf]  ;;  %s3473_s22 = smov 96  }
  0x65   : > { %607 = vadd.xlane.f32.xlu0 %v3724_v1  ;;  %846 = vmatpush.bf16.msra.mxu1 %v2355_v33  ;;  %v2740_v50 = vld [vmem:[#allocation10 + $0x70] sm:$0xf0]  ;;  %v2331_v51 = vor.u32 %v2738_v46, %v2328_v48  ;;  %v2314_v53 = vld [vmem:[#allocation10 + $0x48] sm:$0xf]  ;;  %v2735_v55 = vld [vmem:[#allocation10 + $0x4c] sm:$0xf] }
  0x66   : > { %v611_v5 = vsub.f32 1.0, %v610_v4  ;;  %860 = vmatpush.bf16.msra.mxu2 %v2359_v34  ;;  %v2335_v52 = vor.u32 %v2740_v50, %v2334_v49  ;;  %v2736_v54 = vld [vmem:[#allocation10 + $0x50] sm:$0xf0]  ;;  %v2316_v57 = vld [vmem:[#allocation10 + $0x54] sm:$0xf0]  ;;  %vm918_vm8 = vcmask 130048  }
  0x67   : > { %v2315_v56 = vor.u32 %v2736_v54, %v2314_v53  ;;  %v2322_v58 = vld [vmem:[#allocation10 + $0x50] sm:$0xf]  ;;  %v2737_v59 = vld [vmem:[#allocation10 + $0x58] sm:$0xf0]  ;;  %v2319_v60 = vor.u32 %v2735_v55, %v2316_v57  ;;  %v2732_v2 = vld [vmem:[#allocation10 + $0x34] sm:$0xf] }
  0x68   : > { %v612_v6 = vmul.f32 %v2994_v3, %v611_v5  ;;  %833 = vmatpush.bf16.msra.mxu0 %v2339_v38  ;;  %v2323_v61 = vor.u32 %v2737_v59, %v2322_v58  ;;  %v2302_v62 = vld [vmem:[#allocation10 + $0x30] sm:$0xf]  ;;  %v2733_v63 = vld [vmem:[#allocation10 + $0x38] sm:$0xf0]  ;;  %v2304_v4 = vld [vmem:[#allocation10 + $0x3c] sm:$0xf0] }
  0x69   : > { %847 = vmatpush.bf16.msra.mxu1 %v2343_v42  ;;  %v2310_v5 = vld [vmem:[#allocation10 + $0x38] sm:$0xf]  ;;  %v2298_v17 = vld [vmem:[#allocation10 + $0x20] sm:$0xf]  ;;  %v2731_v18 = vld [vmem:[#allocation10 + $0x28] sm:$0xf0] }
  0x6a   : > { %v613_v7 = vadd.f32 %v2994_v3, %v612_v6  ;;  %861 = vmatpush.bf16.msra.mxu2 %v2347_v43  ;;  %v2734_v6 = vld [vmem:[#allocation10 + $0x40] sm:$0xf0]  ;;  %v2299_v20 = vor.u32 %v2731_v18, %v2298_v17  ;;  %v2278_v21 = vld [vmem:[#allocation10] sm:$0xf]  ;;  %v2727_v22 = vld [vmem:[#allocation10 + $0x8] sm:$0xf0] }
  0x6b   : > { %v2726_v23 = vld [vmem:[#allocation10 + $0x4] sm:$0xf]  ;;  %v2279_v25 = vor.u32 %v2727_v22, %v2278_v21  ;;  %v2280_v26 = vld [vmem:[#allocation10 + $0xc] sm:$0xf0]  ;;  %v2286_v27 = vld [vmem:[#allocation10 + $0x8] sm:$0xf] }
  0x6c   : > { %v3727_v8 = vsel %vm614_vm0, %v2994_v3, %v613_v7  ;;  %834 = vmatpush.bf16.msra.mxu0 %v2327_v47  ;;  %v2303_v3 = vor.u32 %v2733_v63, %v2302_v62  ;;  %v2307_v7 = vor.u32 %v2732_v2, %v2304_v4  ;;  %v2728_v28 = vld [vmem:[#allocation10 + $0x10] sm:$0xf0]  ;;  %v2283_v30 = vor.u32 %v2726_v23, %v2280_v26  ;;  %v2987_v49 = vld [vmem:[#allocation7] ss:$0 sm:$0xff]  ;;  %v2988_v54 = vld [vmem:[#allocation9] ss:$0 sm:$0xff] }
  0x6d   : > { %848 = vmatpush.bf16.msra.mxu1 %v2331_v51  ;;  %v2287_v31 = vor.u32 %v2728_v28, %v2286_v27  ;;  %s3474_s18 = smov 32   ;;  %s3475_s24 = smov 64   ;;  %vm973_vm9 = vcmask 257024   ;;  %vm1080_vm10 = vcmask 519424   ;;  %vm1187_vm11 = vcmask 781824  }
  0x6e   : > { %862 = vmatpush.bf16.msra.mxu2 %v2335_v52  ;;  %vm1294_vm12 = vcmask 1044224   ;;  %s3915_s20 = sld [smem:[#allocation34_spill]]  ;;  %s2835_s14 = sshll.u32 %s3572_s15, 4 }
  0x6f   : > { %s3916_s19 = sld [smem:[#allocation35_spill]]  ;;  %s599_s6 = scalar_lea.vmem [#allocation21], %s2265_s5 }
  0x70   : > { %835 = vmatpush.bf16.msra.mxu0 %v2315_v56  ;;  %s3917_s16 = sld [smem:[#allocation36_spill]]  ;;  %s2075_s15 = scalar_lea.sflag [#allocation6], %s3691_s29 }
  0x71   : > { %849 = vmatpush.bf16.msra.mxu1 %v2319_v60 }
  0x72   : > { %863 = vmatpush.bf16.msra.mxu2 %v2323_v61 }
  0x74   : > { %836 = vmatpush.bf16.msra.mxu0 %v2303_v3 }
  0x75   : > { %850 = vmatpush.bf16.msra.mxu1 %v2307_v7 }
  0x76   : > { %s3387_s23 = scalar_lea.hbm %s3917_s16, 32 }
  0xd0   : > { %v606_v9 = vpop.xlane.xlu0 %605 }
  0xd1   : > { %v616_v10 = vmul.f32 %v3727_v8, %v606_v9  ;;  %v2311_v9 = vor.u32 %v2734_v6, %v2310_v5 }
  0xd3   : > { %v3731_v11 = vsub.f32 %v3721_v0, %v616_v10  ;;  %864 = vmatpush.bf16.msra.mxu2 %v2311_v9  ;;  %v2290_v10 = vld [vmem:[#allocation10 + $0x18] sm:$0xf] }
  0xd5   : > { %v620_v12 = vmul.f32 %v3731_v11, %v3731_v11 }
  0xd7   : > { %622 = vadd.xlane.f32.xlu1 %v620_v12  ;;  %v2730_v12 = vld [vmem:[#allocation10 + $0x20] sm:$0xf0]  ;;  %865 = vmatpush.bf16.msra.mxu2 %v2299_v20 }
  0xd8   : > { %v608_v13 = vpop.xlane.xlu0 %607 }
  0xd9   : > { %v617_v14 = vmul.f32 %v3727_v8, %v608_v13  ;;  %v2729_v13 = vld [vmem:[#allocation10 + $0x1c] sm:$0xf] }
  0xdb   : > { %v3737_v15 = vsub.f32 %v3724_v1, %v617_v14  ;;  %v2291_v14 = vor.u32 %v2730_v12, %v2290_v10  ;;  %866 = vmatpush.bf16.msra.mxu2 %v2287_v31 }
  0xdd   : > { %v621_v16 = vmul.f32 %v3737_v15, %v3737_v15  ;;  %837 = vmatpush.bf16.msra.mxu0 %v2291_v14 }
  0xdf   : > { %624 = vadd.xlane.f32.xlu1 %v621_v16  ;;  %v2292_v16 = vld [vmem:[#allocation10 + $0x24] sm:$0xf0] }
  0xe0   : > { %v2295_v19 = vor.u32 %v2729_v13, %v2292_v16 }
  0xe1   : > { %838 = vmatpush.bf16.msra.mxu0 %v2279_v25 }
  0xe2   : > { %851 = vmatpush.bf16.msra.mxu1 %v2295_v19 }
  0xe6   : > { %852 = vmatpush.bf16.msra.mxu1 %v2283_v30 }
 0x14a   : > { %v623_v24 = vpop.xlane.xlu1 %622 }
 0x14b   : > { %v626_v29 = vmul.f32 %v623_v24, %v3727_v8 }
 0x14d   : > { %v628_v32 = vadd.f32 1e-05, %v626_v29 }
 0x14f   : > { %2995 = vrsqrt.f32 %v628_v32  ;;  %vm636_vm2 = vweird.f32 %v628_v32 }
 0x152   : > { %v625_v33 = vpop.xlane.xlu1 %624 }
 0x153   : > { %v627_v34 = vmul.f32 %v625_v33, %v3727_v8 }
 0x155   : > { %v2996_v35 = vpop.eup %2995  ;;  %v629_v36 = vadd.f32 1e-05, %v627_v34 }
 0x156   : > { %v631_v37 = vmul.f32 %v2996_v35, %v628_v32  ;;  %vm637_vm1 = vweird.f32 %v2996_v35 }
 0x157   : > { %2997 = vrsqrt.f32 %v629_v36  ;;  %vm638_vm3 = vmor %vm636_vm2, %vm637_vm1  ;;  %vm646_vm5 = vweird.f32 %v629_v36 }
 0x158   : > { %v632_v38 = vmul.f32 %v2996_v35, %v631_v37 }
 0x15a   : > { %v633_v39 = vmul.f32 0.5, %v632_v38 }
 0x15c   : > { %v634_v40 = vsub.f32 1.5, %v633_v39 }
 0x15d   : > { %v2998_v41 = vpop.eup %2997 }
 0x15e   : > { %v635_v42 = vmul.f32 %v2996_v35, %v634_v40  ;;  %v641_v43 = vmul.f32 %v2998_v41, %v629_v36  ;;  %vm647_vm4 = vweird.f32 %v2998_v41 }
 0x15f   : > { %vm648_vm6 = vmor %vm646_vm5, %vm647_vm4 }
 0x160   : > { %v642_v44 = vmul.f32 %v2998_v41, %v641_v43  ;;  %v639_v45 = vsel %vm638_vm3, %v2996_v35, %v635_v42 }
 0x161   : > { %v650_v48 = vmul.f32 %v639_v45, %v3731_v11  ;;  %v695_v11 = vld [vmem:[%s3884_s4] sm:$0x7] }
 0x162   : > { %v643_v46 = vmul.f32 0.5, %v642_v44  ;;  %v697_v59 = vperm.slane %v695_v11, 0  ;;  %v698_v60 = vperm.slane %v695_v11, 1  ;;  %v699_v3 = vperm.slane %v695_v11, 2 }
 0x163   : > { %v655_v53 = vmul.f32 %v2987_v49, %v650_v48 }
 0x164   : > { %v644_v47 = vsub.f32 1.5, %v643_v46 }
 0x165   : > { %v660_v56 = vadd.f32 %v2988_v54, %v655_v53 }
 0x166   : > { %v645_v50 = vmul.f32 %v2998_v41, %v644_v47 }
 0x168   : > { %v649_v51 = vsel %vm648_vm6, %v2998_v41, %v645_v50 }
 0x169   : > { %v651_v52 = vmul.f32 %v649_v51, %v3737_v15 }
 0x16b   : > { %v656_v55 = vmul.f32 %v2987_v49, %v651_v52 }
 0x16d   : > { %v661_v57 = vadd.f32 %v2988_v54, %v656_v55 }
 0x16f   : > { %v662_v58 = vpack.c.bf16 %v661_v57, %v660_v56 }
 0x171   : > { %839 = vmatmul.bf16.vlgmr.msra.gmra.mxu0 %v662_v58  ;;  %853 = vmatmul.bf16.vlgmr.msra.gmra.mxu1 %v662_v58 }
 0x172   : > { %867 = vmatmul.bf16.vlgmr.msra.gmra.mxu2 %v662_v58 }
 0x1ee   : > { %v840_v61 = vpop.f32.mrf.mxu0  ;;  %v854_v62 = vpop.f32.mrf.mxu1 }
 0x1ef   : > { %v841_v63 = vadd.f32 %v840_v61, %v697_v59  ;;  %v855_v2 = vadd.f32 %v854_v62, %v698_v60 }
 0x1f1   : > { %v873_v15 = vpack.c.bf16 %v855_v2, %v841_v63 }
 0x1f3   : > { %877 = vst [vmem:[#allocation2] sm:$0xff] %v873_v15 }
 0x1f5   : > { %v868_v4 = vpop.f32.mrf.mxu2 }
 0x1f6   : > { %v869_v5 = vadd.f32 %v868_v4, %v699_v3  ;;  %v842_v6 = vpop.f32.mrf.mxu0  ;;  %v856_v7 = vpop.f32.mrf.mxu1 }
 0x1f7   : > { %v843_v9 = vadd.f32 %v842_v6, %v697_v59  ;;  %v857_v10 = vadd.f32 %v856_v7, %v698_v60 }
 0x1f8   : > { %v874_v12 = vpack.c.bf16 %v869_v5, %v869_v5 }
 0x1f9   : > { %v875_v13 = vpack.c.bf16 %v857_v10, %v843_v9 }
 0x1fa   : > { %878 = vst [vmem:[#allocation2 + $0x8] sm:$0xf] %v874_v12  ;;  %v2388_v18 = vld [vmem:[#allocation2] sm:$0xf]  ;;  %v2378_v19 = vld [vmem:[#allocation2 + $0x4] sm:$0xf] }
 0x1fb   : > { %879 = vst [vmem:[#allocation2 + $0xc] sm:$0xff] %v875_v13  ;;  %v2374_v29 = vld [vmem:[#allocation2] sm:$0xf]  ;;  %v2392_v36 = vld [vmem:[#allocation2 + $0x4] sm:$0xf] }
 0x1fc   : > { %v2420_v39 = vld [vmem:[#allocation2 + $0x4] sm:$0xf]  ;;  %v2416_v42 = vld [vmem:[#allocation2] sm:$0xf] }
 0x1fd   : > { %v870_v14 = vpop.f32.mrf.mxu2  ;;  %v2402_v57 = vld [vmem:[#allocation2] sm:$0xf]  ;;  %v2406_v59 = vld [vmem:[#allocation2 + $0x4] sm:$0xf] }
 0x1fe   : > { %v871_v16 = vadd.f32 %v870_v14, %v699_v3 }
 0x200   : > { %v876_v17 = vpack.c.bf16 %v871_v16, %v871_v16 }
 0x201   : > { %v2383_v26 = vld [vmem:[#allocation2 + $0x8] sm:$0xf] }
 0x202   : > { %880 = vst [vmem:[#allocation2 + $0x14] sm:$0xf] %v876_v17  ;;  %v2753_v20 = vld [vmem:[#allocation2 + $0x8] sm:$0xf0]  ;;  %v2751_v21 = vld [vmem:[#allocation2 + $0xc] sm:$0xf0] }
 0x203   : > { %v2389_v22 = vor.u32 %v2753_v20, %v2388_v18  ;;  %v2379_v23 = vor.u32 %v2751_v21, %v2378_v19  ;;  %v2750_v25 = vld [vmem:[#allocation2 + $0x8] sm:$0xf0]  ;;  %v2754_v35 = vld [vmem:[#allocation2 + $0xc] sm:$0xf0] }
 0x204   : > { %v2375_v30 = vor.u32 %v2750_v25, %v2374_v29  ;;  %v2393_v37 = vor.u32 %v2754_v35, %v2392_v36  ;;  %v2760_v38 = vld [vmem:[#allocation2 + $0xc] sm:$0xf0]  ;;  %v2759_v41 = vld [vmem:[#allocation2 + $0x8] sm:$0xf0] }
 0x205   : > { %987 = vrot.lane.b32.xlu0 %v2389_v22, %s3473_s22  ;;  %v902_v24 = vsel %vm897_vm7, %v2379_v23, 0  ;;  %v2421_v40 = vor.u32 %v2760_v38, %v2420_v39  ;;  %v2417_v43 = vor.u32 %v2759_v41, %v2416_v42  ;;  %v2756_v56 = vld [vmem:[#allocation2 + $0x8] sm:$0xf0]  ;;  %v2757_v11 = vld [vmem:[#allocation2 + $0xc] sm:$0xf0] }
 0x206   : > { %911 = vmatpush.bf16.xpose.msra.mxu3 %v902_v24  ;;  %v2403_v58 = vor.u32 %v2756_v56, %v2402_v57  ;;  %v2407_v60 = vor.u32 %v2757_v11, %v2406_v59 }
 0x209   : > { %v2752_v27 = vld [vmem:[#allocation2 + $0x10] sm:$0xf0] }
 0x20a   : > { %v2384_v28 = vor.u32 %v2752_v27, %v2383_v26 }
 0x20d   : > { %2380 = vmatmul.msk.bf16.vlgmr.msra.gmra.mxu3 %vm897_vm7, %v2375_v30 }
 0x20e   : > { %964 = vmatpush.bf16.msrb.mxu3 %v2384_v28 }
 0x277   : > { %v988_v61 = vpop.permute.xlu0 %987 }
 0x290   : > { %v913_v31 = vpop.f32.mrf.mxu3 }
 0x291   : > { %v919_v32 = vsel %vm918_vm8, %v913_v31, -inf }
 0x292   : > { %920 = vmax.xlane.f32.xlu2 %v919_v32 }
 0x298   : > { %v915_v33 = vpop.f32.mrf.mxu3 }
 0x299   : > { %v922_v34 = vsel %vm918_vm8, %v915_v33, -inf }
 0x29a   : > { %923 = vmax.xlane.f32.xlu2 %v922_v34 }
 0x2b2   : > { %994 = vrot.lane.b32.xlu2 %v2393_v37, %s3473_s22 }
 0x2ba   : > { %1208 = vrot.lane.b32.xlu2 %v2421_v40, %s3474_s18 }
 0x2c2   : > { %1201 = vrot.lane.b32.xlu2 %v2417_v43, %s3474_s18 }
 0x305   : > { %v921_v44 = vpop.xlane.xlu2 %920 }
 0x306   : > { %v925_v45 = vsub.f32 %v913_v31, %v921_v44 }
 0x308   : > { %v927_v46 = vmul.f32 1.442695, %v925_v45 }
 0x30a   : > { %2999 = vpow2.f32 %v927_v46 }
 0x30d   : > { %v924_v47 = vpop.xlane.xlu2 %923 }
 0x30e   : > { %v926_v48 = vsub.f32 %v915_v33, %v924_v47 }
 0x310   : > { %v3000_v49 = vpop.eup %2999  ;;  %v929_v50 = vmul.f32 1.442695, %v926_v48 }
 0x311   : > { %v931_v51 = vsel %vm918_vm8, %v3000_v49, 0.0 }
 0x312   : > { %3001 = vpow2.f32 %v929_v50  ;;  %932 = vadd.xlane.f32.xlu0 %v931_v51 }
 0x315   : > { %v995_v52 = vpop.permute.xlu2 %994 }
 0x316   : > { %v1000_v53 = vsel %vm897_vm7, %v995_v52, 0 }
 0x317   : > { %1009 = vmatpush.bf16.xpose.msra.mxu3 %v1000_v53 }
 0x318   : > { %v3002_v54 = vpop.eup %3001 }
 0x319   : > { %v934_v55 = vsel %vm918_vm8, %v3002_v54, 0.0 }
 0x31a   : > { %935 = vadd.xlane.f32.xlu1 %v934_v55 }
 0x31d   : > { %v1209_v10 = vpop.permute.xlu2 %1208 }
 0x31e   : > { %v1214_v13 = vsel %vm897_vm7, %v1209_v10, 0 }
 0x325   : > { %v1202_v18 = vpop.permute.xlu2 %1201 }
 0x326   : > { %1094 = vrot.lane.b32.xlu0 %v2403_v58, %s3475_s24 }
 0x333   : > { %1101 = vrot.lane.b32.xlu1 %v2407_v60, %s3475_s24 }
 0x385   : > { %v933_v62 = vpop.xlane.xlu0 %932 }
 0x386   : > { %3003 = vrcp.f32 %v933_v62 }
 0x38c   : > { %v3004_v2 = vpop.eup %3003 }
 0x38d   : > { %v936_v63 = vpop.xlane.xlu1 %935  ;;  %v939_v15 = vmul.f32 %v3004_v2, %v3000_v49  ;;  %v2755_v2 = vld [vmem:[#allocation2 + $0x10] sm:$0xf0] }
 0x38e   : > { %3005 = vrcp.f32 %v936_v63 }
 0x38f   : > { %v941_v4 = vpack.c.bf16 %v939_v15, %v939_v15  ;;  %v2397_v15 = vld [vmem:[#allocation2 + $0x8] sm:$0xf] }
 0x391   : > { %v945_v7 = vunpack.c.l.b16 %v941_v4  ;;  %v2758_v4 = vld [vmem:[#allocation2 + $0x10] sm:$0xf0] }
 0x394   : > { %v3006_v3 = vpop.eup %3005 }
 0x395   : > { %v940_v5 = vmul.f32 %v3006_v3, %v3002_v54  ;;  %v2398_v3 = vor.u32 %v2755_v2, %v2397_v15  ;;  %v2766_v2 = vld [vmem:[#allocation12 + $0x18] sm:$0xff]  ;;  %v2765_v15 = vld [vmem:[#allocation12 + $0x10] sm:$0xff] }
 0x397   : > { %v942_v6 = vpack.c.bf16 %v940_v5, %v940_v5  ;;  %v2411_v5 = vld [vmem:[#allocation2 + $0x8] sm:$0xf] }
 0x398   : > { %v1095_v17 = vpop.permute.xlu0 %1094 }
 0x399   : > { %v946_v9 = vunpack.c.l.b16 %v942_v6  ;;  %v2412_v6 = vor.u32 %v2758_v4, %v2411_v5  ;;  %v2763_v4 = vld [vmem:[#allocation12] sm:$0xff] }
 0x39b   : > { %v947_v12 = vpack.c.b16 %v946_v9, %v945_v7  ;;  %v2761_v7 = vld [vmem:[#allocation2 + $0x10] sm:$0xf0]  ;;  %v2425_v9 = vld [vmem:[#allocation2 + $0x8] sm:$0xf] }
 0x39c   : > { %v2426_v10 = vor.u32 %v2761_v7, %v2425_v9 }
 0x39d   : > { %2385 = vmatmul.msk.bf16.vlgmr.msrb.gmra.mxu3 %vm918_vm8, %v947_v12 }
 0x39e   : > { %1223 = vmatpush.bf16.xpose.msrb.mxu3 %v1214_v13 }
 0x3a5   : > { %v1102_v14 = vpop.permute.xlu1 %1101 }
 0x3a6   : > { %v1107_v16 = vsel %vm897_vm7, %v1102_v14, 0 }
 0x3a7   : > { %1116 = vmatpush.bf16.xpose.msrb.mxu2 %v1107_v16 }
 0x3ad   : > { %2394 = vmatmul.msk.bf16.vlgmr.msra.gmra.mxu3 %vm897_vm7, %v988_v61 }
 0x3ae   : > { %2408 = vmatmul.msk.bf16.vlgmr.msrb.gmra.mxu2 %vm897_vm7, %v1095_v17 }
 0x3bd   : > { %2422 = vmatmul.msk.bf16.vlgmr.msrb.gmra.mxu3 %vm897_vm7, %v1202_v18 }
 0x420   : > { %v966_v19 = vpop.f32.mrf.mxu3 }
 0x421   : > { %v971_v20 = vpack.c.bf16 %v966_v19, %v966_v19 }
 0x423   : > { %974 = vst.msk [vmem:[#allocation3] sm:$0xf] %vm973_vm9, %v971_v20 }
 0x428   : > { %v968_v21 = vpop.f32.mrf.mxu3 }
 0x429   : > { %v972_v22 = vpack.c.bf16 %v968_v21, %v968_v21 }
 0x42b   : > { %975 = vst.msk [vmem:[#allocation3 + $0x4] sm:$0xf] %vm973_vm9, %v972_v22 }
 0x430   : > { %v1011_v23 = vpop.f32.mrf.mxu3 }
 0x431   : > { %v1118_v24 = vpop.f32.mrf.mxu2  ;;  %v1016_v25 = vsel %vm918_vm8, %v1011_v23, -inf }
 0x432   : > { %1017 = vmax.xlane.f32.xlu1 %v1016_v25  ;;  %v1123_v26 = vsel %vm918_vm8, %v1118_v24, -inf }
 0x433   : > { %1124 = vmax.xlane.f32.xlu2 %v1123_v26 }
 0x438   : > { %v1013_v27 = vpop.f32.mrf.mxu3 }
 0x439   : > { %v1120_v28 = vpop.f32.mrf.mxu2  ;;  %v1019_v29 = vsel %vm918_vm8, %v1013_v27, -inf }
 0x43a   : > { %1020 = vmax.xlane.f32.xlu0 %v1019_v29  ;;  %v1126_v30 = vsel %vm918_vm8, %v1120_v28, -inf }
 0x43b   : > { %1127 = vmax.xlane.f32.xlu1 %v1126_v30 }
 0x440   : > { %v1225_v31 = vpop.f32.mrf.mxu3 }
 0x441   : > { %v1230_v32 = vsel %vm918_vm8, %v1225_v31, -inf }
 0x442   : > { %1231 = vmax.xlane.f32.xlu0 %v1230_v32 }
 0x448   : > { %v1227_v33 = vpop.f32.mrf.mxu3 }
 0x449   : > { %v1233_v34 = vsel %vm918_vm8, %v1227_v33, -inf }
 0x44a   : > { %1234 = vmax.xlane.f32.xlu2 %v1233_v34 }
 0x4a5   : > { %v1018_v35 = vpop.xlane.xlu1 %1017 }
 0x4a6   : > { %v1125_v36 = vpop.xlane.xlu2 %1124  ;;  %v1022_v45 = vsub.f32 %v1011_v23, %v1018_v35 }
 0x4a7   : > { %v1129_v37 = vsub.f32 %v1118_v24, %v1125_v36 }
 0x4a8   : > { %v1024_v48 = vmul.f32 1.442695, %v1022_v45 }
 0x4a9   : > { %v1131_v38 = vmul.f32 1.442695, %v1129_v37 }
 0x4ab   : > { %3007 = vpow2.f32 %v1131_v38 }
 0x4ad   : > { %v1021_v39 = vpop.xlane.xlu0 %1020 }
 0x4ae   : > { %v1023_v40 = vsub.f32 %v1013_v27, %v1021_v39  ;;  %v1128_v41 = vpop.xlane.xlu1 %1127 }
 0x4af   : > { %v1130_v42 = vsub.f32 %v1120_v28, %v1128_v41 }
 0x4b0   : > { %v1026_v43 = vmul.f32 1.442695, %v1023_v40 }
 0x4b1   : > { %v3008_v44 = vpop.eup %3007  ;;  %v1133_v46 = vmul.f32 1.442695, %v1130_v42 }
 0x4b2   : > { %3009 = vpow2.f32 %v1026_v43  ;;  %v1135_v47 = vsel %vm918_vm8, %v3008_v44, 0.0 }
 0x4b3   : > { %3011 = vpow2.f32 %v1133_v46  ;;  %1136 = vadd.xlane.f32.xlu2 %v1135_v47 }
 0x4b4   : > { %3013 = vpow2.f32 %v1024_v48 }
 0x4b5   : > { %v1232_v49 = vpop.xlane.xlu0 %1231 }
 0x4b6   : > { %v1236_v50 = vsub.f32 %v1225_v31, %v1232_v49 }
 0x4b8   : > { %v3010_v51 = vpop.eup %3009  ;;  %v1238_v52 = vmul.f32 1.442695, %v1236_v50 }
 0x4b9   : > { %v3012_v53 = vpop.eup %3011  ;;  %v1031_v54 = vsel %vm918_vm8, %v3010_v51, 0.0 }
 0x4ba   : > { %3015 = vpow2.f32 %v1238_v52  ;;  %1032 = vadd.xlane.f32.xlu0 %v1031_v54  ;;  %v1138_v55 = vsel %vm918_vm8, %v3012_v53, 0.0  ;;  %v3014_v58 = vpop.eup %3013 }
 0x4bb   : > { %1139 = vadd.xlane.f32.xlu1 %v1138_v55  ;;  %v1028_v61 = vsel %vm918_vm8, %v3014_v58, 0.0 }
 0x4bd   : > { %v1235_v56 = vpop.xlane.xlu2 %1234 }
 0x4be   : > { %v1237_v57 = vsub.f32 %v1227_v33, %v1235_v56 }
 0x4c0   : > { %v3016_v11 = vpop.eup %3015  ;;  %v1240_v59 = vmul.f32 1.442695, %v1237_v57 }
 0x4c1   : > { %v1242_v60 = vsel %vm918_vm8, %v3016_v11, 0.0 }
 0x4c2   : > { %3017 = vpow2.f32 %v1240_v59  ;;  %1243 = vadd.xlane.f32.xlu2 %v1242_v60  ;;  %v2770_v60 = vld [vmem:[#allocation12 + $0x38] sm:$0xff] }
 0x4c3   : > { %1029 = vadd.xlane.f32.xlu1 %v1028_v61  ;;  %1369 = vmatpush.bf16.msrb.mxu1 %v2770_v60  ;;  %v2769_v61 = vld [vmem:[#allocation12 + $0x30] sm:$0xff] }
 0x4c4   : > { %v2792_v60 = vld [vmem:[#allocation18 + $0xac] sm:$0xf] }
 0x4c7   : > { %1370 = vmatpush.bf16.msrb.mxu1 %v2769_v61  ;;  %v2556_v61 = vld [vmem:[#allocation18 + $0xb8] sm:$0xf0] }
 0x4c8   : > { %v3018_v62 = vpop.eup %3017 }
 0x4c9   : > { %v1245_v63 = vsel %vm918_vm8, %v3018_v62, 0.0 }
 0x4cb   : > { %1246 = vadd.xlane.f32.xlu1 %v1245_v63  ;;  %v2767_v63 = vld [vmem:[#allocation12 + $0x20] sm:$0xff] }
 0x4ce   : > { %1050 = vrot.lane.b32.xlu0 %v2398_v3, %s3473_s22  ;;  %v2764_v3 = vld [vmem:[#allocation12 + $0x8] sm:$0xff] }
 0x4da   : > { %1157 = vrot.lane.b32.xlu2 %v2412_v6, %s3475_s24 }
 0x4e4   : > { %1264 = vrot.lane.b32.xlu1 %v2426_v10, %s3474_s18 }
 0x526   : > { %v1137_v12 = vpop.xlane.xlu2 %1136 }
 0x527   : > { %3019 = vrcp.f32 %v1137_v12 }
 0x52d   : > { %v1033_v13 = vpop.xlane.xlu0 %1032  ;;  %v3020_v16 = vpop.eup %3019 }
 0x52e   : > { %v1140_v14 = vpop.xlane.xlu1 %1139  ;;  %v1143_v18 = vmul.f32 %v3020_v16, %v3008_v44 }
 0x52f   : > { %3021 = vrcp.f32 %v1140_v14  ;;  %v2989_v14 = vld [vmem:[#allocation13] ss:$0 sm:$0xff] }
 0x530   : > { %3023 = vrcp.f32 %v1033_v13  ;;  %v1145_v24 = vpack.c.bf16 %v1143_v18, %v1143_v18 }
 0x532   : > { %v1149_v28 = vunpack.c.l.b16 %v1145_v24 }
 0x535   : > { %v3022_v17 = vpop.eup %3021  ;;  %v1244_v19 = vpop.xlane.xlu2 %1243 }
 0x536   : > { %v1144_v20 = vmul.f32 %v3022_v17, %v3012_v53  ;;  %v1030_v21 = vpop.xlane.xlu1 %1029  ;;  %v3024_v22 = vpop.eup %3023 }
 0x537   : > { %3025 = vrcp.f32 %v1030_v21  ;;  %v1037_v25 = vmul.f32 %v3024_v22, %v3010_v51 }
 0x538   : > { %v1146_v23 = vpack.c.bf16 %v1144_v20, %v1144_v20 }
 0x539   : > { %v1039_v30 = vpack.c.bf16 %v1037_v25, %v1037_v25 }
 0x53a   : > { %v1150_v26 = vunpack.c.l.b16 %v1146_v23 }
 0x53b   : > { %v1043_v36 = vunpack.c.l.b16 %v1039_v30  ;;  %v2799_v30 = vld [vmem:[#allocation18 + $0xe4] sm:$0xf] }
 0x53c   : > { %v1151_v32 = vpack.c.b16 %v1150_v26, %v1149_v28  ;;  %v2578_v28 = vld [vmem:[#allocation18 + $0xe0] sm:$0xf] }
 0x53d   : > { %v3026_v27 = vpop.eup %3025  ;;  %v1158_v29 = vpop.permute.xlu2 %1157 }
 0x53e   : > { %v1036_v31 = vmul.f32 %v3026_v27, %v3014_v58  ;;  %1170 = vmatpush.bf16.msra.mxu2 %v1158_v29  ;;  %v1247_v34 = vpop.xlane.xlu1 %1246  ;;  %v2801_v29 = vld [vmem:[#allocation18 + $0xec] sm:$0xf0] }
 0x53f   : > { %3027 = vrcp.f32 %v1247_v34  ;;  %v2802_v34 = vld [vmem:[#allocation18 + $0xf4] sm:$0xf0] }
 0x540   : > { %v1038_v33 = vpack.c.bf16 %v1036_v31, %v1036_v31  ;;  %v1051_v35 = vpop.permute.xlu0 %1050  ;;  %3029 = vrcp.f32 %v1244_v19  ;;  %v2579_v31 = vor.u32 %v2801_v29, %v2578_v28  ;;  %v2498_v29 = vld [vmem:[#allocation18 + $0x40] sm:$0xf] }
 0x541   : > { %1063 = vmatpush.bf16.msrb.mxu0 %v1051_v35  ;;  %2413 = vmatmul.msk.bf16.vlgmr.msra.gmra.mxu2 %vm918_vm8, %v1151_v32  ;;  %v2580_v32 = vld [vmem:[#allocation18 + $0xf0] sm:$0xf0] }
 0x542   : > { %v1042_v37 = vunpack.c.l.b16 %v1038_v33  ;;  %v2586_v33 = vld [vmem:[#allocation18 + $0xe8] sm:$0xf]  ;;  %v2583_v35 = vor.u32 %v2799_v30, %v2580_v32  ;;  %1646 = vmatpush.bf16.msrb.mxu2 %v2579_v31  ;;  %v2781_v30 = vld [vmem:[#allocation18 + $0x4c] sm:$0xf0]  ;;  %v2779_v31 = vld [vmem:[#allocation18 + $0x44] sm:$0xf] }
 0x543   : > { %v2499_v32 = vor.u32 %v2781_v30, %v2498_v29  ;;  %v2991_v29 = vld [vmem:[#allocation16] ss:$0 sm:$0xff] }
 0x544   : > { %v1044_v38 = vpack.c.b16 %v1043_v36, %v1042_v37  ;;  %v2587_v36 = vor.u32 %v2802_v34, %v2586_v33  ;;  %v2800_v37 = vld [vmem:[#allocation18 + $0xec] sm:$0xf]  ;;  %1660 = vmatpush.bf16.msra.mxu3 %v2583_v35  ;;  %v2500_v33 = vld [vmem:[#allocation18 + $0x50] sm:$0xf0]  ;;  %v2506_v34 = vld [vmem:[#allocation18 + $0x48] sm:$0xf] }
 0x545   : > { %v3028_v39 = vpop.eup %3027  ;;  %v2782_v35 = vld [vmem:[#allocation18 + $0x54] sm:$0xf0] }
 0x546   : > { %2399 = vmatmul.msk.bf16.vlgmr.msrb.gmra.mxu0 %vm918_vm8, %v1044_v38  ;;  %v3030_v40 = vpop.eup %3029  ;;  %v1251_v41 = vmul.f32 %v3028_v39, %v3018_v62  ;;  %v2768_v62 = vld [vmem:[#allocation12 + $0x28] sm:$0xff]  ;;  %v2588_v38 = vld [vmem:[#allocation18 + $0xf8] sm:$0xf0] }
 0x547   : > { %v1250_v42 = vmul.f32 %v3030_v40, %v3016_v11  ;;  %1371 = vmatpush.bf16.msrb.mxu1 %v2768_v62  ;;  %v2591_v39 = vor.u32 %v2800_v37, %v2588_v38  ;;  %v2562_v40 = vld [vmem:[#allocation18 + $0xc0] sm:$0xf]  ;;  %v2559_v62 = vor.u32 %v2792_v60, %v2556_v61  ;;  %v2503_v37 = vor.u32 %v2779_v31, %v2500_v33  ;;  %v2474_v60 = vld [vmem:[#allocation18 + $0x8] sm:$0xf]  ;;  %v2774_v61 = vld [vmem:[#allocation18 + $0x14] sm:$0xf0] }
 0x548   : > { %v1253_v43 = vpack.c.bf16 %v1251_v41, %v1251_v41  ;;  %v2797_v41 = vld [vmem:[#allocation18 + $0xcc] sm:$0xf0]  ;;  %v2507_v38 = vor.u32 %v2782_v35, %v2506_v34  ;;  %v2826_v34 = vld [vmem:[#allocation19 + $0xb8] sm:$0xff] }
 0x549   : > { %v1252_v44 = vpack.c.bf16 %v1250_v42, %v1250_v42  ;;  %v2795_v42 = vld [vmem:[#allocation18 + $0xc4] sm:$0xf]  ;;  %v2834_v35 = vld [vmem:[#allocation19 + $0xf8] sm:$0xff] }
 0x54a   : > { %v1257_v45 = vunpack.c.l.b16 %v1253_v43  ;;  %v2563_v43 = vor.u32 %v2797_v41, %v2562_v40  ;;  %v2508_v40 = vld [vmem:[#allocation18 + $0x58] sm:$0xf0]  ;;  %v2482_v41 = vld [vmem:[#allocation18 + $0x20] sm:$0xf] }
 0x54b   : > { %v1256_v46 = vunpack.c.l.b16 %v1252_v44  ;;  %1372 = vmatpush.bf16.msrb.mxu1 %v2767_v63  ;;  %v2564_v44 = vld [vmem:[#allocation18 + $0xd0] sm:$0xf0]  ;;  %v2530_v63 = vld [vmem:[#allocation18 + $0x80] sm:$0xf] }
 0x54c   : > { %1647 = vmatpush.bf16.msrb.mxu2 %v2563_v43 }
 0x54d   : > { %v1258_v48 = vpack.c.b16 %v1257_v45, %v1256_v46  ;;  %v2570_v45 = vld [vmem:[#allocation18 + $0xc8] sm:$0xf]  ;;  %v2798_v46 = vld [vmem:[#allocation18 + $0xd4] sm:$0xf0] }
 0x54f   : > { %1373 = vmatpush.bf16.msrb.mxu1 %v2766_v2  ;;  %v2789_v2 = vld [vmem:[#allocation18 + $0x8c] sm:$0xf0] }
 0x553   : > { %1374 = vmatpush.bf16.msrb.mxu1 %v2765_v15  ;;  %v2787_v15 = vld [vmem:[#allocation18 + $0x84] sm:$0xf] }
 0x556   : > { %v1265_v47 = vpop.permute.xlu1 %1264 }
 0x557   : > { %1277 = vmatpush.bf16.msra.mxu0 %v1265_v47  ;;  %1375 = vmatpush.bf16.msrb.mxu1 %v2764_v3  ;;  %v2567_v47 = vor.u32 %v2795_v42, %v2564_v44  ;;  %v2531_v3 = vor.u32 %v2789_v2, %v2530_v63  ;;  %v2777_v44 = vld [vmem:[#allocation18 + $0x2c] sm:$0xf0]  ;;  %v2475_v2 = vor.u32 %v2774_v61, %v2474_v60 }
 0x558   : > { %v2805_v60 = vld [vmem:[#allocation19 + $0x10] sm:$0xff] }
 0x559   : > { %1661 = vmatpush.bf16.msra.mxu3 %v2567_v47  ;;  %v2483_v47 = vor.u32 %v2777_v44, %v2482_v41  ;;  %v2817_v41 = vld [vmem:[#allocation19 + $0x70] sm:$0xff]  ;;  %v2808_v44 = vld [vmem:[#allocation19 + $0x28] sm:$0xff] }
 0x55a   : > { %2427 = vmatmul.msk.bf16.vlgmr.msra.gmra.mxu0 %vm918_vm8, %v1258_v48  ;;  %v2571_v48 = vor.u32 %v2798_v46, %v2570_v45  ;;  %v2775_v45 = vld [vmem:[#allocation18 + $0x24] sm:$0xf]  ;;  %v2484_v46 = vld [vmem:[#allocation18 + $0x30] sm:$0xf0] }
 0x55b   : > { %1376 = vmatpush.bf16.msrb.mxu1 %v2763_v4  ;;  %1674 = vmatpush.bf16.msrb.mxu0 %v2587_v36  ;;  %v2532_v4 = vld [vmem:[#allocation18 + $0x90] sm:$0xf0] }
 0x55c   : > { %v2813_v61 = vld [vmem:[#allocation19 + $0x50] sm:$0xff] }
 0x55f   : > { %1688 = vmatpush.bf16.msra.mxu1 %v2591_v39  ;;  %1675 = vmatpush.bf16.msrb.mxu0 %v2571_v48  ;;  %v2780_v39 = vld [vmem:[#allocation18 + $0x4c] sm:$0xf]  ;;  %v2487_v48 = vor.u32 %v2775_v45, %v2484_v46  ;;  %v2822_v46 = vld [vmem:[#allocation19 + $0x98] sm:$0xff] }
 0x560   : > { %v2511_v43 = vor.u32 %v2780_v39, %v2508_v40  ;;  %v2832_v39 = vld [vmem:[#allocation19 + $0xe8] sm:$0xff]  ;;  %v2809_v40 = vld [vmem:[#allocation19 + $0x30] sm:$0xff] }
 0x561   : > { %v2816_v45 = vld [vmem:[#allocation19 + $0x68] sm:$0xff] }
 0x5c3   : > { %v1065_v49 = vpop.f32.mrf.mxu0 }
 0x5c4   : > { %v1070_v50 = vpack.c.bf16 %v1065_v49, %v1065_v49  ;;  %v1172_v51 = vpop.f32.mrf.mxu2  ;;  %v2796_v49 = vld [vmem:[#allocation18 + $0xcc] sm:$0xf] }
 0x5c5   : > { %v1177_v52 = vpack.c.bf16 %v1172_v51, %v1172_v51 }
 0x5c6   : > { %1074 = vrot.lane.b32.xlu0 %v1070_v50, %s3474_s18  ;;  %v2572_v50 = vld [vmem:[#allocation18 + $0xd8] sm:$0xf0] }
 0x5c7   : > { %1181 = vrot.lane.b32.xlu2 %v1177_v52, %s3475_s24  ;;  %v2575_v51 = vor.u32 %v2796_v49, %v2572_v50  ;;  %v2546_v52 = vld [vmem:[#allocation18 + $0xa0] sm:$0xf]  ;;  %v2490_v49 = vld [vmem:[#allocation18 + $0x28] sm:$0xf]  ;;  %v2778_v50 = vld [vmem:[#allocation18 + $0x34] sm:$0xf0] }
 0x5c9   : > { %1689 = vmatpush.bf16.msra.mxu1 %v2575_v51  ;;  %v2776_v51 = vld [vmem:[#allocation18 + $0x2c] sm:$0xf] }
 0x5cb   : > { %v1067_v53 = vpop.f32.mrf.mxu0 }
 0x5cc   : > { %v1071_v54 = vpack.c.bf16 %v1067_v53, %v1067_v53  ;;  %v1174_v55 = vpop.f32.mrf.mxu2  ;;  %v2793_v53 = vld [vmem:[#allocation18 + $0xac] sm:$0xf0] }
 0x5cd   : > { %v1178_v56 = vpack.c.bf16 %v1174_v55, %v1174_v55  ;;  %v2547_v55 = vor.u32 %v2793_v53, %v2546_v52  ;;  %1690 = vmatpush.bf16.msra.mxu1 %v2559_v62  ;;  %v2491_v53 = vor.u32 %v2778_v50, %v2490_v49  ;;  %v2772_v62 = vld [vmem:[#allocation18 + $0xc] sm:$0xf]  ;;  %v2815_v49 = vld [vmem:[#allocation19 + $0x60] sm:$0xff]  ;;  %v3818_v50 = vld [vmem:[%s3915_s20] sm:$0xf] }
 0x5ce   : > { %1076 = vrot.lane.b32.xlu0 %v1071_v54, %s3474_s18  ;;  %v2791_v54 = vld [vmem:[#allocation18 + $0xa4] sm:$0xf]  ;;  %s2087_s18 = sshll.u32 %s599_s6, 4  ;;  %s2088_s18 = int_to_ptr.vmem [resolvable:$true] %s2087_s18 }
 0x5cf   : > { %1648 = vmatpush.bf16.msrb.mxu2 %v2547_v55  ;;  %v2466_v55 = vld [vmem:[#allocation18] sm:$0xf] }
 0x5d3   : > { %1649 = vmatpush.bf16.msrb.mxu2 %v2531_v3 }
 0x5d6   : > { %1183 = vrot.lane.b32.xlu0 %v1178_v56, %s3475_s24  ;;  %v2548_v56 = vld [vmem:[#allocation18 + $0xb0] sm:$0xf0] }
 0x5d7   : > { %v1279_v57 = vpop.f32.mrf.mxu0 }
 0x5d8   : > { %v1284_v58 = vpack.c.bf16 %v1279_v57, %v1279_v57  ;;  %v2554_v57 = vld [vmem:[#allocation18 + $0xa8] sm:$0xf] }
 0x5da   : > { %1288 = vrot.lane.b32.xlu1 %v1284_v58, %s3473_s22  ;;  %v2794_v58 = vld [vmem:[#allocation18 + $0xb4] sm:$0xf0] }
 0x5df   : > { %v1281_v11 = vpop.f32.mrf.mxu0 }
 0x5e0   : > { %v1285_v59 = vpack.c.bf16 %v1281_v11, %v1281_v11  ;;  %v2551_v11 = vor.u32 %v2791_v54, %v2548_v56  ;;  %v2492_v54 = vld [vmem:[#allocation18 + $0x38] sm:$0xf0] }
 0x5e1   : > { %v2495_v56 = vor.u32 %v2776_v51, %v2492_v54  ;;  %v2821_v51 = vld [vmem:[#allocation19 + $0x90] sm:$0xff]  ;;  %v2814_v54 = vld [vmem:[#allocation19 + $0x58] sm:$0xff] }
 0x5e2   : > { %1290 = vrot.lane.b32.xlu2 %v1285_v59, %s3473_s22  ;;  %v2555_v59 = vor.u32 %v2794_v58, %v2554_v57  ;;  %1662 = vmatpush.bf16.msra.mxu3 %v2551_v11  ;;  %v2773_v57 = vld [vmem:[#allocation18 + $0xc] sm:$0xf0]  ;;  %v2771_v58 = vld [vmem:[#allocation18 + $0x4] sm:$0xf]  ;;  %v2468_v11 = vld [vmem:[#allocation18 + $0x10] sm:$0xf0]  ;;  %s2086_s22 = scalar_lea.hbm %s3917_s16, %s2835_s14 }
 0x5e3   : > { %v2471_v63 = vor.u32 %v2771_v58, %v2468_v11  ;;  %v2828_v58 = vld [vmem:[#allocation19 + $0xc8] sm:$0xff]  ;;  %s2089_s24 = sshll.u32 %s2086_s22, 4  ;;  %s2090_s24 = int_to_ptr.hbm [resolvable:$true] %s2089_s24 }
 0x5e4   : > { %1676 = vmatpush.bf16.msrb.mxu0 %v2555_v59  ;;  %v2467_v59 = vor.u32 %v2773_v57, %v2466_v55  ;;  %v1480_v55 = vperm.slane %v3818_v50, 2  ;;  %v2820_v57 = vld [vmem:[#allocation19 + $0x88] sm:$0xff]  ;;  %s3381_s5 = sshra.s32 %s2090_s24, 4  ;;  %s3382_s5 = int_to_ptr.hbm [resolvable:$true] %s3381_s5 }
 0x5e5   : > { %s3383_s21 = scalar_lea.hbm %s3382_s5, 16  ;;  %p3388_p13 = scmp.lt.s32.totalorder %s3382_s5, %s3917_s16 }
 0x5e6   : > { %p3384_p1 = scmp.ne.s32.totalorder %s3382_s5, %s3383_s21  ;;  %p3389_p7 = scmp.lt.s32.totalorder %s3387_s23, %s3383_s21 }
 0x5e8   : > { %p3385_p3 = pnand %p3384_p1, %p3658_p0  ;;  %p3390_p8 = por %p3389_p7, %p3388_p13 }
 0x5ea   : > { %p3386_p4 = pneg %p3385_p3 }
 0x5ec   : > { %p3391_p9 = pnand %p3390_p8, %p3386_p4 }
 0x621   : > { %v1182_v6 = vpop.permute.xlu2 %1181 }
 0x638   : > { %v1075_v5 = vpop.permute.xlu0 %1074 }
 0x639   : > { %1081 = vst.msk [vmem:[#allocation3] sm:$0xf] %vm1080_vm10, %v1075_v5  ;;  %v2538_v5 = vld [vmem:[#allocation18 + $0x88] sm:$0xf] }
 0x63a   : > { %1188 = vst.msk [vmem:[#allocation3] sm:$0xf] %vm1187_vm11, %v1182_v6  ;;  %v2790_v6 = vld [vmem:[#allocation18 + $0x94] sm:$0xf0] }
 0x63c   : > { %v1291_v10 = vpop.permute.xlu2 %1290 }
 0x640   : > { %v1077_v7 = vpop.permute.xlu0 %1076 }
 0x641   : > { %1082 = vst.msk [vmem:[#allocation3 + $0x4] sm:$0xf] %vm1080_vm10, %v1077_v7  ;;  %v2535_v7 = vor.u32 %v2787_v15, %v2532_v4  ;;  %v2476_v15 = vld [vmem:[#allocation18 + $0x18] sm:$0xf0] }
 0x642   : > { %v2479_v3 = vor.u32 %v2772_v62, %v2476_v15  ;;  %v1479_v15 = vperm.slane %v3818_v50, 1 }
 0x643   : > { %1663 = vmatpush.bf16.msra.mxu3 %v2535_v7 }
 0x648   : > { %v1184_v9 = vpop.permute.xlu0 %1183 }
 0x649   : > { %1189 = vst.msk [vmem:[#allocation3 + $0x4] sm:$0xf] %vm1187_vm11, %v1184_v9  ;;  %v2539_v9 = vor.u32 %v2790_v6, %v2538_v5 }
 0x64a   : > { %1296 = vst.msk [vmem:[#allocation3 + $0x4] sm:$0xf] %vm1294_vm12, %v1291_v10  ;;  %v2788_v10 = vld [vmem:[#allocation18 + $0x8c] sm:$0xf] }
 0x64b   : > { %1677 = vmatpush.bf16.msrb.mxu0 %v2539_v9 }
 0x64c   : > { %v1289_v12 = vpop.permute.xlu1 %1288 }
 0x64d   : > { %1295 = vst.msk [vmem:[#allocation3] sm:$0xf] %vm1294_vm12, %v1289_v12  ;;  %v2540_v12 = vld [vmem:[#allocation18 + $0x98] sm:$0xf0] }
 0x654   : > { %v2762_v13 = vld [vmem:[#allocation3] sm:$0xff] }
 0x655   : > { %1377 = vmatmul.bf16.vlgmr.msrb.gmra.mxu1 %v2762_v13  ;;  %v2543_v13 = vor.u32 %v2788_v10, %v2540_v12 }
 0x657   : > { %1691 = vmatpush.bf16.msra.mxu1 %v2543_v13 }
 0x6d2   : > { %v1378_v16 = vpop.f32.mrf.mxu1 }
 0x6d3   : > { %v1383_v17 = vadd.f32 %v1378_v16, %v3721_v0  ;;  %v2785_v16 = vld [vmem:[#allocation18 + $0x6c] sm:$0xf0] }
 0x6d5   : > { %v3792_v18 = vadd.f32 %v2989_v14, %v1383_v17  ;;  %v2783_v17 = vld [vmem:[#allocation18 + $0x64] sm:$0xf] }
 0x6d7   : > { %1393 = vadd.xlane.f32.xlu0 %v3792_v18 }
 0x6da   : > { %v1380_v19 = vpop.f32.mrf.mxu1 }
 0x6db   : > { %v1384_v20 = vadd.f32 %v1380_v19, %v3724_v1 }
 0x6dd   : > { %v3796_v21 = vadd.f32 %v2989_v14, %v1384_v20  ;;  %v2514_v14 = vld [vmem:[#allocation18 + $0x60] sm:$0xf]  ;;  %v2516_v20 = vld [vmem:[#allocation18 + $0x70] sm:$0xf0] }
 0x6de   : > { %v2515_v19 = vor.u32 %v2785_v16, %v2514_v14 }
 0x6df   : > { %1395 = vadd.xlane.f32.xlu1 %v3796_v21 }
 0x6e0   : > { %1650 = vmatpush.bf16.msrb.mxu2 %v2515_v19 }
 0x6e4   : > { %1651 = vmatpush.bf16.msrb.mxu2 %v2499_v32 }
 0x6e8   : > { %1652 = vmatpush.bf16.msrb.mxu2 %v2483_v47  ;;  %v2830_v47 = vld [vmem:[#allocation19 + $0xd8] sm:$0xff] }
 0x6ec   : > { %1653 = vmatpush.bf16.msrb.mxu2 %v2467_v59 }
 0x74a   : > { %v1394_v22 = vpop.xlane.xlu0 %1393 }
 0x74b   : > { %v1397_v23 = vmul.f32 %v1394_v22, %v3727_v8  ;;  %v2522_v22 = vld [vmem:[#allocation18 + $0x68] sm:$0xf] }
 0x74d   : > { %v3801_v24 = vsub.f32 %v3792_v18, %v1397_v23  ;;  %v2786_v23 = vld [vmem:[#allocation18 + $0x74] sm:$0xf0] }
 0x74f   : > { %v1401_v0 = vmul.f32 %v3801_v24, %v3801_v24 }
 0x751   : > { %1403 = vadd.xlane.f32.xlu2 %v1401_v0  ;;  %v2519_v0 = vor.u32 %v2783_v17, %v2516_v20 }
 0x752   : > { %v1396_v25 = vpop.xlane.xlu1 %1395 }
 0x753   : > { %v1398_v26 = vmul.f32 %v1396_v25, %v3727_v8  ;;  %v2523_v25 = vor.u32 %v2786_v23, %v2522_v22  ;;  %1664 = vmatpush.bf16.msra.mxu3 %v2519_v0  ;;  %v2990_v0 = vld [vmem:[#allocation15] ss:$0 sm:$0xff] }
 0x755   : > { %v3807_v27 = vsub.f32 %v3796_v21, %v1398_v26  ;;  %v2784_v26 = vld [vmem:[#allocation18 + $0x6c] sm:$0xf]  ;;  %1678 = vmatpush.bf16.msrb.mxu0 %v2523_v25 }
 0x757   : > { %v1402_v1 = vmul.f32 %v3807_v27, %v3807_v27  ;;  %1665 = vmatpush.bf16.msra.mxu3 %v2503_v37  ;;  %v2810_v37 = vld [vmem:[#allocation19 + $0x38] sm:$0xff] }
 0x758   : > { %2014 = vmatpush.bf16.msra.mxu2 %v2810_v37 }
 0x759   : > { %1405 = vadd.xlane.f32.xlu0 %v1402_v1  ;;  %v2524_v1 = vld [vmem:[#allocation18 + $0x78] sm:$0xf0]  ;;  %1679 = vmatpush.bf16.msrb.mxu0 %v2507_v38  ;;  %v2824_v38 = vld [vmem:[#allocation19 + $0xa8] sm:$0xff] }
 0x75a   : > { %v2527_v28 = vor.u32 %v2784_v26, %v2524_v1 }
 0x75b   : > { %1666 = vmatpush.bf16.msra.mxu3 %v2487_v48  ;;  %v2807_v48 = vld [vmem:[#allocation19 + $0x20] sm:$0xff] }
 0x75c   : > { %1692 = vmatpush.bf16.msra.mxu1 %v2527_v28  ;;  %2015 = vmatpush.bf16.msra.mxu2 %v2809_v40 }
 0x75d   : > { %1680 = vmatpush.bf16.msrb.mxu0 %v2491_v53  ;;  %v2806_v53 = vld [vmem:[#allocation19 + $0x18] sm:$0xff] }
 0x75f   : > { %1667 = vmatpush.bf16.msra.mxu3 %v2471_v63 }
 0x760   : > { %1693 = vmatpush.bf16.msra.mxu1 %v2511_v43  ;;  %v2831_v43 = vld [vmem:[#allocation19 + $0xe0] sm:$0xff]  ;;  %2016 = vmatpush.bf16.msra.mxu2 %v2808_v44 }
 0x761   : > { %1681 = vmatpush.bf16.msrb.mxu0 %v2475_v2  ;;  %v1478_v2 = vperm.slane %v3818_v50, 0 }
 0x764   : > { %1694 = vmatpush.bf16.msra.mxu1 %v2495_v56  ;;  %2017 = vmatpush.bf16.msra.mxu2 %v2807_v48  ;;  %v1481_v56 = vperm.slane %v3818_v50, 3 }
 0x765   : > { %2042 = vmatpush.bf16.msra.mxu0 %v2826_v34 }
 0x768   : > { %1695 = vmatpush.bf16.msra.mxu1 %v2479_v3  ;;  %2018 = vmatpush.bf16.msra.mxu2 %v2806_v53  ;;  %v2819_v3 = vld [vmem:[#allocation19 + $0x80] sm:$0xff] }
 0x76c   : > { %2056 = vmatpush.bf16.msrb.mxu1 %v2834_v35  ;;  %2019 = vmatpush.bf16.msra.mxu2 %v2805_v60 }
 0x7c4   : > { %v1404_v36 = vpop.xlane.xlu2 %1403 }
 0x7c5   : > { %v1407_v42 = vmul.f32 %v1404_v36, %v3727_v8  ;;  %v2833_v36 = vld [vmem:[#allocation19 + $0xf0] sm:$0xff] }
 0x7c6   : > { %2057 = vmatpush.bf16.msrb.mxu1 %v2833_v36 }
 0x7c7   : > { %v1409_v52 = vadd.f32 1e-05, %v1407_v42  ;;  %v2823_v42 = vld [vmem:[#allocation19 + $0xa0] sm:$0xff] }
 0x7c9   : > { %3031 = vrsqrt.f32 %v1409_v52  ;;  %vm1417_vm14 = vweird.f32 %v1409_v52 }
 0x7ca   : > { %2058 = vmatpush.bf16.msrb.mxu1 %v2832_v39 }
 0x7cc   : > { %v1406_v4 = vpop.xlane.xlu0 %1405 }
 0x7cd   : > { %v1408_v5 = vmul.f32 %v1406_v4, %v3727_v8  ;;  %v2827_v4 = vld [vmem:[#allocation19 + $0xc0] sm:$0xff] }
 0x7ce   : > { %2059 = vmatpush.bf16.msrb.mxu1 %v2831_v43 }
 0x7cf   : > { %v3032_v6 = vpop.eup %3031  ;;  %v1410_v7 = vadd.f32 1e-05, %v1408_v5 }
 0x7d0   : > { %v1412_v9 = vmul.f32 %v3032_v6, %v1409_v52  ;;  %vm1418_vm13 = vweird.f32 %v3032_v6  ;;  %v2829_v52 = vld [vmem:[#allocation19 + $0xd0] sm:$0xff] }
 0x7d1   : > { %3033 = vrsqrt.f32 %v1410_v7  ;;  %vm1419_vm15 = vmor %vm1417_vm14, %vm1418_vm13  ;;  %vm1427_vm1 = vweird.f32 %v1410_v7 }
 0x7d2   : > { %v1413_v10 = vmul.f32 %v3032_v6, %v1412_v9  ;;  %2060 = vmatpush.bf16.msrb.mxu1 %v2830_v47  ;;  %v2812_v9 = vld [vmem:[#allocation19 + $0x48] sm:$0xff] }
 0x7d4   : > { %v1414_v12 = vmul.f32 0.5, %v1413_v10 }
 0x7d6   : > { %v1415_v13 = vsub.f32 1.5, %v1414_v12  ;;  %2061 = vmatpush.bf16.msrb.mxu1 %v2829_v52 }
 0x7d7   : > { %v3034_v14 = vpop.eup %3033 }
 0x7d8   : > { %v1416_v16 = vmul.f32 %v3032_v6, %v1415_v13  ;;  %v1422_v17 = vmul.f32 %v3034_v14, %v1410_v7  ;;  %vm1428_vm0 = vweird.f32 %v3034_v14  ;;  %v2804_v7 = vld [vmem:[#allocation19 + $0x8] sm:$0xff] }
 0x7d9   : > { %vm1429_vm2 = vmor %vm1427_vm1, %vm1428_vm0  ;;  %2020 = vmatpush.bf16.msra.mxu2 %v2804_v7 }
 0x7da   : > { %v1423_v19 = vmul.f32 %v3034_v14, %v1422_v17  ;;  %v1420_v20 = vsel %vm1419_vm15, %v3032_v6, %v1416_v16  ;;  %2062 = vmatpush.bf16.msrb.mxu1 %v2828_v58 }
 0x7db   : > { %v1431_v23 = vmul.f32 %v1420_v20, %v3801_v24  ;;  %v2825_v24 = vld [vmem:[#allocation19 + $0xb0] sm:$0xff] }
 0x7dc   : > { %v1424_v8 = vmul.f32 0.5, %v1423_v19  ;;  %2043 = vmatpush.bf16.msra.mxu0 %v2825_v24 }
 0x7dd   : > { %v1436_v28 = vmul.f32 %v2990_v0, %v1431_v23  ;;  %v2811_v23 = vld [vmem:[#allocation19 + $0x40] sm:$0xff] }
 0x7de   : > { %v1425_v22 = vsub.f32 1.5, %v1424_v8  ;;  %2063 = vmatpush.bf16.msrb.mxu1 %v2827_v4 }
 0x7df   : > { %v1441_v31 = vadd.f32 %v2991_v29, %v1436_v28 }
 0x7e0   : > { %v1426_v25 = vmul.f32 %v3034_v14, %v1425_v22  ;;  %2044 = vmatpush.bf16.msra.mxu0 %v2824_v38  ;;  %v2803_v22 = vld [vmem:[#allocation19] sm:$0xff] }
 0x7e1   : > { %2021 = vmatpush.bf16.msra.mxu2 %v2803_v22 }
 0x7e2   : > { %v1430_v26 = vsel %vm1429_vm2, %v3034_v14, %v1426_v25 }
 0x7e3   : > { %v1432_v1 = vmul.f32 %v1430_v26, %v3807_v27  ;;  %v2818_v27 = vld [vmem:[#allocation19 + $0x78] sm:$0xff] }
 0x7e4   : > { %2028 = vmatpush.bf16.msrb.mxu3 %v2818_v27  ;;  %2045 = vmatpush.bf16.msra.mxu0 %v2823_v42 }
 0x7e5   : > { %v1437_v30 = vmul.f32 %v2990_v0, %v1432_v1 }
 0x7e7   : > { %v1442_v32 = vadd.f32 %v2991_v29, %v1437_v30 }
 0x7e8   : > { %2029 = vmatpush.bf16.msrb.mxu3 %v2817_v41  ;;  %2046 = vmatpush.bf16.msra.mxu0 %v2822_v46 }
 0x7e9   : > { %v1443_v33 = vpack.c.bf16 %v1442_v32, %v1441_v31 }
 0x7eb   : > { %1654 = vmatmul.bf16.vlgmr.msrb.gmra.mxu2 %v1443_v33  ;;  %1668 = vmatmul.bf16.vlgmr.msra.gmra.mxu3 %v1443_v33 }
 0x7ec   : > { %1682 = vmatmul.bf16.vlgmr.msrb.gmra.mxu0 %v1443_v33  ;;  %1696 = vmatmul.bf16.vlgmr.msra.gmra.mxu1 %v1443_v33 }
 0x7ed   : > { %2030 = vmatpush.bf16.msrb.mxu3 %v2816_v45  ;;  %2047 = vmatpush.bf16.msra.mxu0 %v2821_v51 }
 0x7f1   : > { %2031 = vmatpush.bf16.msrb.mxu3 %v2815_v49  ;;  %2048 = vmatpush.bf16.msra.mxu0 %v2820_v57 }
 0x7f5   : > { %2032 = vmatpush.bf16.msrb.mxu3 %v2814_v54  ;;  %2049 = vmatpush.bf16.msra.mxu0 %v2819_v3 }
 0x7f9   : > { %2033 = vmatpush.bf16.msrb.mxu3 %v2813_v61 }
 0x7fd   : > { %2034 = vmatpush.bf16.msrb.mxu3 %v2812_v9 }
 0x801   : > { %2035 = vmatpush.bf16.msrb.mxu3 %v2811_v23 }
 0x869   : > { %v1683_v11 = vpop.f32.mrf.mxu0  ;;  %v1697_v59 = vpop.f32.mrf.mxu1 }
 0x86a   : > { %v3822_v62 = vadd.f32 %v1683_v11, %v1480_v55  ;;  %v3824_v63 = vadd.f32 %v1697_v59, %v1481_v56 }
 0x86c   : > { %v1704_v5 = vmul.f32 -1.702, %v3822_v62  ;;  %v1705_v6 = vmul.f32 -1.702, %v3824_v63 }
 0x86e   : > { %v1714_v10 = vmul.f32 1.442695, %v1704_v5  ;;  %v1655_v12 = vpop.f32.mrf.mxu2  ;;  %v1669_v13 = vpop.f32.mrf.mxu3  ;;  %v1716_v17 = vmul.f32 1.442695, %v1705_v6 }
 0x86f   : > { %v3830_v14 = vadd.f32 %v1655_v12, %v1478_v2  ;;  %v3832_v16 = vadd.f32 %v1669_v13, %v1479_v15 }
 0x870   : > { %3035 = vpow2.f32 %v1714_v10 }
 0x871   : > { %v1702_v19 = vmul.f32 -1.702, %v3830_v14  ;;  %v1685_v20 = vpop.f32.mrf.mxu0  ;;  %v1699_v8 = vpop.f32.mrf.mxu1  ;;  %v1703_v0 = vmul.f32 -1.702, %v3832_v16  ;;  %3037 = vpow2.f32 %v1716_v17 }
 0x872   : > { %v1686_v25 = vadd.f32 %v1685_v20, %v1480_v55  ;;  %v1700_v26 = vadd.f32 %v1699_v8, %v1481_v56 }
 0x873   : > { %v1710_v1 = vmul.f32 1.442695, %v1702_v19  ;;  %v1712_v30 = vmul.f32 1.442695, %v1703_v0 }
 0x874   : > { %v1708_v28 = vmul.f32 -1.702, %v1686_v25  ;;  %v1709_v29 = vmul.f32 -1.702, %v1700_v26 }
 0x875   : > { %3039 = vpow2.f32 %v1710_v1 }
 0x876   : > { %v1722_v31 = vmul.f32 1.442695, %v1708_v28  ;;  %v1657_v32 = vpop.f32.mrf.mxu2  ;;  %v1671_v33 = vpop.f32.mrf.mxu3  ;;  %v1724_v34 = vmul.f32 1.442695, %v1709_v29 }
 0x877   : > { %v1658_v35 = vadd.f32 %v1657_v32, %v1478_v2  ;;  %v1672_v24 = vadd.f32 %v1671_v33, %v1479_v15  ;;  %v3036_v36 = vpop.eup %3035 }
 0x878   : > { %3041 = vpow2.f32 %v1722_v31  ;;  %v3038_v38 = vpop.eup %3037  ;;  %v1728_v39 = vadd.f32 1.0, %v3036_v36 }
 0x879   : > { %v1706_v37 = vmul.f32 -1.702, %v1658_v35  ;;  %v1707_v27 = vmul.f32 -1.702, %v1672_v24  ;;  %3043 = vpow2.f32 %v1712_v30  ;;  %v1729_v44 = vadd.f32 1.0, %v3038_v38 }
 0x87a   : > { %3045 = vpow2.f32 %v1724_v34 }
 0x87b   : > { %v1718_v40 = vmul.f32 1.442695, %v1706_v37  ;;  %v3040_v41 = vpop.eup %3039  ;;  %v1720_v42 = vmul.f32 1.442695, %v1707_v27 }
 0x87c   : > { %v1726_v45 = vadd.f32 1.0, %v3040_v41 }
 0x87d   : > { %3047 = vpow2.f32 %v1718_v40 }
 0x87e   : > { %v3042_v43 = vpop.eup %3041  ;;  %3049 = vrcp.f32 %v1728_v39 }
 0x87f   : > { %v1732_v46 = vadd.f32 1.0, %v3042_v43  ;;  %v3044_v47 = vpop.eup %3043  ;;  %3051 = vpow2.f32 %v1720_v42 }
 0x880   : > { %v3046_v48 = vpop.eup %3045  ;;  %v1727_v51 = vadd.f32 1.0, %v3044_v47 }
 0x881   : > { %3053 = vrcp.f32 %v1732_v46  ;;  %v1733_v49 = vadd.f32 1.0, %v3046_v48 }
 0x882   : > { %3055 = vrcp.f32 %v1729_v44 }
 0x883   : > { %v3048_v50 = vpop.eup %3047  ;;  %3057 = vrcp.f32 %v1726_v45 }
 0x884   : > { %3059 = vrcp.f32 %v1733_v49  ;;  %v1730_v52 = vadd.f32 1.0, %v3048_v50  ;;  %v3050_v53 = vpop.eup %3049 }
 0x885   : > { %v3052_v54 = vpop.eup %3051  ;;  %v1744_v58 = vmul.f32 %v3050_v53, %v3822_v62 }
 0x886   : > { %3061 = vrcp.f32 %v1730_v52  ;;  %v1731_v56 = vadd.f32 1.0, %v3052_v54 }
 0x887   : > { %v3054_v55 = vpop.eup %3053  ;;  %3063 = vrcp.f32 %v1727_v51 }
 0x888   : > { %v3056_v57 = vpop.eup %3055  ;;  %v1748_v11 = vmul.f32 %v3054_v55, %v1686_v25  ;;  %3065 = vrcp.f32 %v1731_v56 }
 0x889   : > { %v3058_v59 = vpop.eup %3057  ;;  %v1745_v2 = vmul.f32 %v3056_v57, %v3824_v63  ;;  %v2992_v63 = vld [vmem:[%s3916_s19] ss:$0 sm:$0xff] }
 0x88a   : > { %v3060_v60 = vpop.eup %3059  ;;  %v1752_v61 = vpack.c.bf16 %v1748_v11, %v1744_v58  ;;  %v1742_v5 = vmul.f32 %v3058_v59, %v3830_v14 }
 0x88b   : > { %v1749_v15 = vmul.f32 %v3060_v60, %v1700_v26 }
 0x88c   : > { %v3062_v3 = vpop.eup %3061  ;;  %2050 = vmatmul.bf16.vlgmr.msra.gmra.mxu0 %v1752_v61 }
 0x88d   : > { %v3064_v4 = vpop.eup %3063  ;;  %v1753_v6 = vpack.c.bf16 %v1749_v15, %v1745_v2  ;;  %v1746_v7 = vmul.f32 %v3062_v3, %v1658_v35 }
 0x88e   : > { %v3066_v9 = vpop.eup %3065  ;;  %v1743_v62 = vmul.f32 %v3064_v4, %v3832_v16 }
 0x88f   : > { %v1750_v10 = vpack.c.bf16 %v1746_v7, %v1742_v5  ;;  %2064 = vmatmul.bf16.vlgmr.msrb.gmra.mxu1 %v1753_v6  ;;  %v1747_v12 = vmul.f32 %v3066_v9, %v1672_v24 }
 0x891   : > { %2022 = vmatmul.bf16.vlgmr.msra.gmra.mxu2 %v1750_v10  ;;  %v1751_v13 = vpack.c.bf16 %v1747_v12, %v1743_v62 }
 0x893   : > { %2036 = vmatmul.bf16.vlgmr.msrb.gmra.mxu3 %v1751_v13 }
 0x909   : > { %v2051_v14 = vpop.f32.mrf.mxu0 }
 0x90c   : > { %v2065_v22 = vpop.f32.mrf.mxu1 }
 0x911   : > { %v2053_v29 = vpop.f32.mrf.mxu0 }
 0x914   : > { %v2023_v17 = vpop.f32.mrf.mxu2  ;;  %v2067_v31 = vpop.f32.mrf.mxu1 }
 0x915   : > { %v2024_v19 = vadd.f32 %v2992_v63, %v2023_v17 }
 0x916   : > { %v2037_v20 = vpop.f32.mrf.mxu3 }
 0x917   : > { %v2038_v8 = vadd.f32 %v2037_v20, %v2024_v19 }
 0x919   : > { %v2052_v23 = vadd.f32 %v2051_v14, %v2038_v8 }
 0x91b   : > { %v2066_v0 = vadd.f32 %v2065_v22, %v2052_v23 }
 0x91c   : > { %v2025_v25 = vpop.f32.mrf.mxu2 }
 0x91d   : > { %v2026_v16 = vadd.f32 %v2992_v63, %v2025_v25  ;;  %v2070_v26 = vadd.f32 %v2066_v0, %v3792_v18 }
 0x91e   : > { %v2039_v1 = vpop.f32.mrf.mxu3 }
 0x91f   : > { %2072 = vst [vmem:[%s599_s6] sm:$0xff] %v2070_v26  ;;  %v2040_v28 = vadd.f32 %v2039_v1, %v2026_v16 }
 0x921   : > { %v2054_v30 = vadd.f32 %v2053_v29, %v2040_v28 }
 0x923   : > { %v2068_v32 = vadd.f32 %v2067_v31, %v2054_v30 }
 0x925   : > { %v2071_v18 = vadd.f32 %v2068_v32, %v3796_v21 }
 0x927   : > { %2073 = vst [vmem:[%s599_s6 + $0x8] sm:$0xff] %v2071_v18 }
 0x928   : > { %3394 = shalt.err (!%p3391_p9)
}
 0x929   : > { %s3476_s29 = smov 128   ;;  %s3477_s14 = smov 8  }
 0x92a   : > { %2874 = dma.vmem_to_hbm [thread:$0]  (%p3658_p0), %s2088_s18, 256, %s2090_s24, %s2075_s15, %s3476_s29, %s3476_s29, %s3477_s14  }
 0x92b PF: > { %s2104_s6 = sand.u32 1, %s3441_s25   ;;  %p3918_p10 = scmp.ge.s32.totalorder %s3453_s28, 2 }
 0x92c   : > { %s2105_s17 = scalar_lea.sflag [#allocation6], %s2104_s6 }
 0x92d   : > { %p2909_p11 = pnand %p3918_p10, %p3664_p6 }
 0x92f   : > { %p2910_p12 = pneg %p2909_p11 }
 0x931   : > { %3436 = dma.done.wait (%p2910_p12), %s2105_s17, 256  }
 0x932   : > { %3438 = vsyncadd (%p2910_p12), %s2105_s17, 4294967040  ;;  %p31_p2 = scmp.ge.s32.totalorder %s3634_s1, 4   ;;  %s3919_s25 = smov %s3445_s26 }
 0x933   : > { %s3920_s26 = smov %s3449_s27  ;;  %s3921_s27 = smov %s3646_s30 }
 0x934   : > { %s3922_s28 = smov %s3634_s1  ;;  %33 = sbr.rel (!%p31_p2) target bundleno = 19 (0x13), region = 153 }
 0x939   :  { %2111 = vsyncpa [#allocation5], 1 }
 0x93a   :  { %2113 = vsyncpa [#allocation5 + $0x1], 1 }
 0x93b   :  { %2114 = vsyncpa [#allocation8], 1 }
 0x93c   :  { %2115 = vsyncpa [#allocation11], 1 }
 0x93d   :  { %2116 = vsyncpa [#allocation14], 1 }
 0x93e   :  { %2117 = vsyncpa [#allocation17], 1 }
 0x93f   :  { %2118 = vsyncpa [#allocation20], 1 }
 0x940   :  { %2119 = vsyncpa [#allocation6], 1 }
 0x941   :  { %2121 = vsyncpa [#allocation6 + $0x1], 1 }

</bundles_post_ra>
